<compile_context>
chip_gen: v5e
topology: v5e:2x2
jax: 0.10.0
libtpu: 0.0.40
codegen_flags: <defaults>
</compile_context>

<pallas_src>
import functools

import jax
import jax.numpy as jnp
from jax.experimental import pallas as pl
from jax.experimental.pallas import tpu as pltpu


# --------------------------------------------------------------------------
# Pass 1a: depthwise 3x3, stride == 1, lane-folded layout (W and C folded onto
# the lane axis).  One grid step = one image.  Also emits per-image partial
# BN1 statistics (sum / sum of squares per folded lane).
# --------------------------------------------------------------------------
def _dw_folded_kernel(xpf_ref, wdwf_ref, dw_ref, st_ref, *, Ho, Wo, C):
    F = Wo * C
    acc = jnp.zeros((Ho, F), jnp.float32)
    for kh in range(3):
        for kw in range(3):
            t = kh * 3 + kw
            # Slice the tap window straight from the ref: rows kh..kh+Ho-1,
            # folded lanes offset by kw*C (static offsets).
            tap = xpf_ref[pl.ds(kh, Ho), pl.ds(kw * C, F)]
            acc = acc + tap * wdwf_ref[pl.ds(t, 1), :]
    dw_ref[...] = acc
    st_ref[pl.ds(0, 1), :] = jnp.sum(acc, axis=0, keepdims=True)
    st_ref[pl.ds(1, 1), :] = jnp.sum(acc * acc, axis=0, keepdims=True)


# --------------------------------------------------------------------------
# Pass 1b: depthwise 3x3, general stride, NHWC layout.  Strided taps are read
# directly from the ref (no stride-1 conv + subsample).
# --------------------------------------------------------------------------
def _dw_general_kernel(xp_ref, wdw_ref, dw_ref, st_ref, *, Ho, Wo, C, stride):
    acc = jnp.zeros((Ho, Wo, C), jnp.float32)
    for kh in range(3):
        for kw in range(3):
            t = kh * 3 + kw
            if stride == 1:
                tap = xp_ref[pl.ds(kh, Ho), pl.ds(kw, Wo), :]
            else:
                tap = xp_ref[pl.ds(kh, Ho, stride), pl.ds(kw, Wo, stride), :]
            acc = acc + tap * wdw_ref[pl.ds(t, 1), :]
    dw_ref[...] = acc
    st_ref[pl.ds(0, 1), :] = jnp.sum(acc, axis=(0, 1)).reshape(1, C)
    st_ref[pl.ds(1, 1), :] = jnp.sum(acc * acc, axis=(0, 1)).reshape(1, C)


# --------------------------------------------------------------------------
# Pass 2a: BN1 (pre-folded scale/shift) + ReLU, accumulate sum(y) and the
# Gram matrix Y^T Y across row tiles (outputs stay VMEM-resident across the
# grid -> "arbitrary" axis).  These two tiny tensors are enough to derive the
# BN2 batch statistics of z = y @ W in the wrapper.
# --------------------------------------------------------------------------
def _y_stats_kernel(x_ref, sc_ref, sh_ref, sum_ref, gram_ref):
    @pl.when(pl.program_id(0) == 0)
    def _():
        sum_ref[...] = jnp.zeros_like(sum_ref)
        gram_ref[...] = jnp.zeros_like(gram_ref)

    y = jnp.maximum(x_ref[...] * sc_ref[...] + sh_ref[...], 0.0)
    sum_ref[...] += jnp.sum(y, axis=0, keepdims=True)
    # Y^T @ Y : contract over the row (sublane) axis of both operands.
    gram_ref[...] += jax.lax.dot_general(
        y, y, (((0,), (0,)), ((), ())), preferred_element_type=jnp.float32)


# --------------------------------------------------------------------------
# Pass 2b: fully fused BN1 + ReLU + pointwise matmul (MXU) + BN2 + ReLU.
# Layout-agnostic 2-D (rows x features); lane-dense stores of the output.
# --------------------------------------------------------------------------
def _fused_pw_kernel(x_ref, sc1_ref, sh1_ref, w_ref, sc2_ref, sh2_ref, o_ref):
    y = jnp.maximum(x_ref[...] * sc1_ref[...] + sh1_ref[...], 0.0)
    z = jnp.dot(y, w_ref[...], preferred_element_type=jnp.float32)
    o_ref[...] = jnp.maximum(z * sc2_ref[...] + sh2_ref[...], 0.0)


def _row_tile(rows, cap=512):
    """Largest multiple-of-8 divisor of `rows` not exceeding `cap` (else rows)."""
    best = rows
    for t in range(8, min(rows, cap) + 1, 8):
        if rows % t == 0:
            best = t
    return best


def mobilenet_block(x_nchw, w_dw, w_pw, g1, b1, g2, b2, *, stride=1, eps=1e-5):
    """Pallas implementation of MobileNet_Block.forward (training-mode BN).

    x_nchw: (N, C_in, H, W)      w_dw: (C_in, 1, 3, 3)    w_pw: (C_out, C_in, 1, 1)
    g1,b1 : (C_in,) bn1 affine   g2,b2: (C_out,) bn2 affine
    returns (N, C_out, Ho, Wo)
    """
    f32 = jnp.float32
    N, C, H, W = x_nchw.shape
    C_out = w_pw.shape[0]
    assert H % stride == 0 and W % stride == 0
    Ho = (H - 1) // stride + 1
    Wo = (W - 1) // stride + 1
    Hp, Wp = H + 2, W + 2

    # ---- glue: NCHW -> NHWC, pad=1, weight re-layout (fused by XLA) ----
    x = jnp.transpose(x_nchw.astype(f32), (0, 2, 3, 1))
    xp = jnp.pad(x, ((0, 0), (1, 1), (1, 1), (0, 0)))            # (N, Hp, Wp, C)
    wdw = jnp.transpose(w_dw[:, 0].astype(f32), (1, 2, 0)).reshape(9, C)   # (9, C)
    wpw = jnp.transpose(w_pw[:, :, 0, 0].astype(f32), (1, 0))    # (C, C_out)

    cparams_par = pltpu.CompilerParams(
        dimension_semantics=("parallel",),
        vmem_limit_bytes=32 * 1024 * 1024,
    )
    cparams_arb = pltpu.CompilerParams(
        dimension_semantics=("arbitrary",),
        vmem_limit_bytes=32 * 1024 * 1024,
    )

    # ================= pass 1: depthwise conv + BN1 partial stats =============
    fold_dw = (stride == 1)
    if fold_dw:
        F1 = Wo * C
        xpf = xp.reshape(N, Hp, Wp * C)                          # fold (W+2, C) onto lanes
        wdwf = jnp.tile(wdw, (1, Wo))                            # (9, Wo*C) per-lane taps
        dw_out, st1 = pl.pallas_call(
            functools.partial(_dw_folded_kernel, Ho=Ho, Wo=Wo, C=C),
            grid=(N,),
            in_specs=[
                pl.BlockSpec((None, Hp, Wp * C), lambda n: (n, 0, 0)),
                pl.BlockSpec((9, F1), lambda n: (0, 0)),
            ],
            out_specs=(
                pl.BlockSpec((None, Ho, F1), lambda n: (n, 0, 0)),
                pl.BlockSpec((None, 2, F1), lambda n: (n, 0, 0)),
            ),
            out_shape=(
                jax.ShapeDtypeStruct((N, Ho, F1), f32),
                jax.ShapeDtypeStruct((N, 2, F1), f32),
            ),
            compiler_params=cparams_par,
        )(xpf, wdwf)
        s1 = st1.sum(axis=0).reshape(2, Wo, C).sum(axis=1)       # (2, C)
    else:
        dw_out, st1 = pl.pallas_call(
            functools.partial(_dw_general_kernel, Ho=Ho, Wo=Wo, C=C, stride=stride),
            grid=(N,),
            in_specs=[
                pl.BlockSpec((None, Hp, Wp, C), lambda n: (n, 0, 0, 0)),
                pl.BlockSpec((9, C), lambda n: (0, 0)),
            ],
            out_specs=(
                pl.BlockSpec((None, Ho, Wo, C), lambda n: (n, 0, 0, 0)),
                pl.BlockSpec((None, 2, C), lambda n: (n, 0, 0)),
            ),
            out_shape=(
                jax.ShapeDtypeStruct((N, Ho, Wo, C), f32),
                jax.ShapeDtypeStruct((N, 2, C), f32),
            ),
            compiler_params=cparams_par,
        )(xp, wdw)
        s1 = st1.sum(axis=0)                                     # (2, C)

    # ---- BN1 stats -> per-channel scale/shift (single-pass variance) ----
    cnt = float(N * Ho * Wo)                                     # samples per channel
    mean1 = s1[0] / cnt
    var1 = jnp.maximum(s1[1] / cnt - mean1 * mean1, 0.0)
    scale1 = g1.astype(f32) * jax.lax.rsqrt(var1 + eps)
    shift1 = b1.astype(f32) - mean1 * scale1

    # ========== choose lane-dense (folded) vs plain layout for passes 2a/2b ===
    fold_pw = (Wo * C <= 512) and (Wo * C_out <= 2048)
    if fold_pw:
        F_in, F_out, G = Wo * C, Wo * C_out, Wo
        mat = jnp.kron(jnp.eye(Wo, dtype=f32), wpw)              # block-diagonal (F_in, F_out)
        sc1 = jnp.tile(scale1, G).reshape(1, F_in)
        sh1 = jnp.tile(shift1, G).reshape(1, F_in)
        x2 = dw_out.reshape(N * Ho, Wo * C)                      # free reshape in HBM
    else:
        F_in, F_out, G = C, C_out, 1
        mat = wpw
        sc1 = scale1.reshape(1, C)
        sh1 = shift1.reshape(1, C)
        x2 = dw_out.reshape(N * Ho * Wo, C)

    R = x2.shape[0]
    TR = _row_tile(R)
    T = R // TR

    # ================= pass 2a: sum(y) and Gram(Y) for BN2 stats ==============
    s_y, gram = pl.pallas_call(
        _y_stats_kernel,
        grid=(T,),
        in_specs=[
            pl.BlockSpec((TR, F_in), lambda i: (i, 0)),
            pl.BlockSpec((1, F_in), lambda i: (0, 0)),
            pl.BlockSpec((1, F_in), lambda i: (0, 0)),
        ],
        out_specs=(
            pl.BlockSpec((1, F_in), lambda i: (0, 0)),
            pl.BlockSpec((F_in, F_in), lambda i: (0, 0)),
        ),
        out_shape=(
            jax.ShapeDtypeStruct((1, F_in), f32),
            jax.ShapeDtypeStruct((F_in, F_in), f32),
        ),
        compiler_params=cparams_arb,
    )(x2, sc1, sh1)

    # ---- fold the folded-lane stats back to channel space (tiny, wrapper) ----
    if fold_pw:
        s_yc = s_y.reshape(Wo, C).sum(axis=0)                    # (C,)
        g4 = gram.reshape(Wo, C, Wo, C)
        idx = jnp.arange(Wo)
        M = g4[idx, :, idx, :].sum(axis=0)                       # (C, C) sum of diag blocks
    else:
        s_yc = s_y.reshape(C)
        M = gram

    # ---- BN2 stats of z = y @ wpw, derived analytically ----
    mean2 = (s_yc @ wpw) / cnt                                   # (C_out,)
    e2 = jnp.einsum('ca,cd,da->a', wpw, M, wpw) / cnt            # E[z^2] per channel
    var2 = jnp.maximum(e2 - mean2 * mean2, 0.0)
    scale2 = g2.astype(f32) * jax.lax.rsqrt(var2 + eps)
    shift2 = b2.astype(f32) - mean2 * scale2
    sc2 = jnp.tile(scale2, G).reshape(1, F_out)
    sh2 = jnp.tile(shift2, G).reshape(1, F_out)

    # ========== pass 2b: fused BN1 + ReLU + pointwise matmul + BN2 + ReLU =====
    ce = pl.CostEstimate(
        flops=2 * R * F_in * F_out + 6 * R * (F_in + F_out),
        transcendentals=0,
        bytes_accessed=4 * (R * F_in + F_in * F_out + R * F_out),
    )
    out2d = pl.pallas_call(
        _fused_pw_kernel,
        grid=(T,),
        in_specs=[
            pl.BlockSpec((TR, F_in), lambda i: (i, 0)),
            pl.BlockSpec((1, F_in), lambda i: (0, 0)),
            pl.BlockSpec((1, F_in), lambda i: (0, 0)),
            pl.BlockSpec((F_in, F_out), lambda i: (0, 0)),
            pl.BlockSpec((1, F_out), lambda i: (0, 0)),
            pl.BlockSpec((1, F_out), lambda i: (0, 0)),
        ],
        out_specs=pl.BlockSpec((TR, F_out), lambda i: (i, 0)),
        out_shape=jax.ShapeDtypeStruct((R, F_out), f32),
        compiler_params=cparams_par,
        cost_estimate=ce,
    )(x2, sc1, sh1, mat, sc2, sh2)

    out_nhwc = out2d.reshape(N, Ho, Wo, C_out)
    return jnp.transpose(out_nhwc, (0, 3, 1, 2))                 # back to NCHW


def _reference(x, w_dw, w_pw, g1, b1, g2, b2, *, stride=1, eps=1e-5):
    """Plain-JAX reference matching PyTorch training-mode forward."""
    C = x.shape[1]

    def bn_relu(v, g, b):
        m = jnp.mean(v, axis=(0, 2, 3), keepdims=True)
        var = jnp.mean((v - m) ** 2, axis=(0, 2, 3), keepdims=True)
        out = (v - m) * jax.lax.rsqrt(var + eps) * g[None, :, None, None] \
              + b[None, :, None, None]
        return jnp.maximum(out, 0.0)

    dw = jax.lax.conv_general_dilated(
        x, w_dw, (stride, stride), ((1, 1), (1, 1)),
        feature_group_count=C, dimension_numbers=("NCHW", "OIHW", "NCHW"))
    dw = bn_relu(dw, g1, b1)
    pw = jax.lax.conv_general_dilated(
        dw, w_pw, (1, 1), ((0, 0), (0, 0)),
        dimension_numbers=("NCHW", "OIHW", "NCHW"))
    return bn_relu(pw, g2, b2)


if __name__ == "__main__":
    key = jax.random.PRNGKey(0)
    N, C_in, H, W = 2, 8, 16, 16
    C_out = 16
    stride = 1

    k_x, k_dw, k_pw = jax.random.split(key, 3)
    x = jax.random.normal(k_x, (N, C_in, H, W), jnp.float32)
    w_dw = jax.random.normal(k_dw, (C_in, 1, 3, 3), jnp.float32) * 0.3
    w_pw = jax.random.normal(k_pw, (C_out, C_in, 1, 1), jnp.float32) * 0.3
    # PyTorch BatchNorm2d default init: weight=1, bias=0
    g1, b1 = jnp.ones((C_in,), jnp.float32), jnp.zeros((C_in,), jnp.float32)
    g2, b2 = jnp.ones((C_out,), jnp.float32), jnp.zeros((C_out,), jnp.float32)

    fwd = jax.jit(functools.partial(mobilenet_block, stride=stride))
    out = jax.block_until_ready(fwd(x, w_dw, w_pw, g1, b1, g2, b2))

    ref = _reference(x, w_dw, w_pw, g1, b1, g2, b2, stride=stride)
    err = float(jnp.max(jnp.abs(out - ref)))
    assert out.shape == (N, C_out, H // stride, W // stride), out.shape
    assert err < 2e-4, f"max abs error too large: {err}"
    print("KERNEL_OK")
</pallas_src>

<mosaic_0001>
module attributes {stable_mosaic.version = 11 : i64} {
  func.func @_y_stats_kernel(%arg0: i32, %arg1: memref<32x128xf32, #tpu.memory_space<vmem>>, %arg2: memref<1x128xf32, #tpu.memory_space<vmem>>, %arg3: memref<1x128xf32, #tpu.memory_space<vmem>>, %arg4: memref<1x128xf32, #tpu.memory_space<vmem>>, %arg5: memref<128x128xf32, #tpu.memory_space<vmem>>) attributes {dimension_semantics = [#tpu.dimension_semantics<arbitrary>], iteration_bounds = array<i64: 1>, scalar_prefetch = 0 : i64, scratch_operands = 0 : i64, tpu.core_type = #tpu.core_type<tc>, window_params = [{transform_indices = @transform_0, window_bounds = array<i64: 32, 128>}, {pipeline_mode = #tpu.pipeline_mode<synchronous>, transform_indices = @transform_1, window_bounds = array<i64: 1, 128>}, {pipeline_mode = #tpu.pipeline_mode<synchronous>, transform_indices = @transform_2, window_bounds = array<i64: 1, 128>}, {pipeline_mode = #tpu.pipeline_mode<synchronous>, transform_indices = @transform_3, window_bounds = array<i64: 1, 128>}, {pipeline_mode = #tpu.pipeline_mode<synchronous>, transform_indices = @transform_4, window_bounds = array<i64: 128, 128>}]} {
    %c0_i32 = arith.constant 0 : i32
    %0 = arith.cmpi eq, %arg0, %c0_i32 : i32
    %1 = arith.extui %0 : i1 to i32
    %c0_i32_0 = arith.constant 0 : i32
    %2 = arith.cmpi ne, %1, %c0_i32_0 : i32
    scf.if %2 {
      %cst_16 = arith.constant 0.000000e+00 : f32
      %21 = vector.broadcast %cst_16 : f32 to vector<1x128xf32>
      %c0_17 = arith.constant 0 : index
      %c0_18 = arith.constant 0 : index
      %22 = vector.load %arg4[%c0_17, %c0_18] : memref<1x128xf32, #tpu.memory_space<vmem>>, vector<1x128xf32>
      tpu.vector_store %arg4[%c0_17, %c0_18], %21 {strides = array<i32>} : memref<1x128xf32, #tpu.memory_space<vmem>>, vector<1x128xf32>,
      %cst_19 = arith.constant 0.000000e+00 : f32
      %23 = vector.broadcast %cst_19 : f32 to vector<128x128xf32>
      %c0_20 = arith.constant 0 : index
      %c0_21 = arith.constant 0 : index
      %24 = vector.load %arg5[%c0_20, %c0_21] : memref<128x128xf32, #tpu.memory_space<vmem>>, vector<128x128xf32>
      tpu.vector_store %arg5[%c0_20, %c0_21], %23 {strides = array<i32>} : memref<128x128xf32, #tpu.memory_space<vmem>>, vector<128x128xf32>,
    } else {
    }
    %c0 = arith.constant 0 : index
    %c0_1 = arith.constant 0 : index
    %3 = vector.load %arg1[%c0, %c0_1] : memref<32x128xf32, #tpu.memory_space<vmem>>, vector<32x128xf32>
    %c0_2 = arith.constant 0 : index
    %c0_3 = arith.constant 0 : index
    %4 = vector.load %arg2[%c0_2, %c0_3] : memref<1x128xf32, #tpu.memory_space<vmem>>, vector<1x128xf32>
    %5 = vector.broadcast %4 : vector<1x128xf32> to vector<32x128xf32>
    %6 = arith.mulf %3, %5 : vector<32x128xf32>
    %c0_4 = arith.constant 0 : index
    %c0_5 = arith.constant 0 : index
    %7 = vector.load %arg3[%c0_4, %c0_5] : memref<1x128xf32, #tpu.memory_space<vmem>>, vector<1x128xf32>
    %8 = vector.broadcast %7 : vector<1x128xf32> to vector<32x128xf32>
    %9 = arith.addf %6, %8 : vector<32x128xf32>
    %cst = arith.constant 0.000000e+00 : f32
    %10 = vector.broadcast %cst : f32 to vector<32x128xf32>
    %11 = arith.maximumf %9, %10 : vector<32x128xf32>
    %c0_6 = arith.constant 0 : index
    %c0_7 = arith.constant 0 : index
    %12 = vector.load %arg4[%c0_6, %c0_7] : memref<1x128xf32, #tpu.memory_space<vmem>>, vector<1x128xf32>
    %cst_8 = arith.constant dense<0.000000e+00> : vector<128xf32>
    %13 = vector.multi_reduction <add>, %11, %cst_8 [0] : vector<32x128xf32> to vector<128xf32>
    %14 = vector.shape_cast %13 : vector<128xf32> to vector<1x128xf32>
    %15 = arith.addf %12, %14 : vector<1x128xf32>
    %c0_9 = arith.constant 0 : index
    %c0_10 = arith.constant 0 : index
    %16 = vector.load %arg4[%c0_9, %c0_10] : memref<1x128xf32, #tpu.memory_space<vmem>>, vector<1x128xf32>
    tpu.vector_store %arg4[%c0_9, %c0_10], %15 {strides = array<i32>} : memref<1x128xf32, #tpu.memory_space<vmem>>, vector<1x128xf32>,
    %c0_11 = arith.constant 0 : index
    %c0_12 = arith.constant 0 : index
    %17 = vector.load %arg5[%c0_11, %c0_12] : memref<128x128xf32, #tpu.memory_space<vmem>>, vector<128x128xf32>
    %cst_13 = arith.constant dense<0.000000e+00> : vector<128x128xf32>
    %18 = tpu.matmul %11, %11, %cst_13 {dimension_numbers = #tpu.dot_dimension_numbers<[0], [0], [1], [1], [0, 1, 1, 1], [], []>} : vector<32x128xf32>, vector<32x128xf32>, vector<128x128xf32> -> vector<128x128xf32>
    %19 = arith.addf %17, %18 : vector<128x128xf32>
    %c0_14 = arith.constant 0 : index
    %c0_15 = arith.constant 0 : index
    %20 = vector.load %arg5[%c0_14, %c0_15] : memref<128x128xf32, #tpu.memory_space<vmem>>, vector<128x128xf32>
    tpu.vector_store %arg5[%c0_14, %c0_15], %19 {strides = array<i32>} : memref<128x128xf32, #tpu.memory_space<vmem>>, vector<128x128xf32>,
    return
  }
  func.func @transform_0(%arg0: i32) -> (i32, i32) {
    %c0_i32 = arith.constant 0 : i32
    %c0_i32_0 = arith.constant 0 : i32
    return %arg0, %c0_i32 : i32, i32
  }
  func.func @transform_1(%arg0: i32) -> (i32, i32) {
    %c0_i32 = arith.constant 0 : i32
    %c0_i32_0 = arith.constant 0 : i32
    %c0_i32_1 = arith.constant 0 : i32
    return %c0_i32, %c0_i32_0 : i32, i32
  }
  func.func @transform_2(%arg0: i32) -> (i32, i32) {
    %c0_i32 = arith.constant 0 : i32
    %c0_i32_0 = arith.constant 0 : i32
    %c0_i32_1 = arith.constant 0 : i32
    return %c0_i32, %c0_i32_0 : i32, i32
  }
  func.func @transform_3(%arg0: i32) -> (i32, i32) {
    %c0_i32 = arith.constant 0 : i32
    %c0_i32_0 = arith.constant 0 : i32
    %c0_i32_1 = arith.constant 0 : i32
    return %c0_i32, %c0_i32_0 : i32, i32
  }
  func.func @transform_4(%arg0: i32) -> (i32, i32) {
    %c0_i32 = arith.constant 0 : i32
    %c0_i32_0 = arith.constant 0 : i32
    %c0_i32_1 = arith.constant 0 : i32
    return %c0_i32, %c0_i32_0 : i32, i32
  }
}

module attributes {stable_mosaic.version = 11 : i64} {
  func.func @_dw_folded_kernel(%arg0: i32, %arg1: memref<1x18x144xf32, #tpu.memory_space<vmem>>, %arg2: memref<9x128xf32, #tpu.memory_space<vmem>>, %arg3: memref<1x16x128xf32, #tpu.memory_space<vmem>>, %arg4: memref<1x2x128xf32, #tpu.memory_space<vmem>>) attributes {dimension_semantics = [#tpu.dimension_semantics<parallel>], iteration_bounds = array<i64: 2>, scalar_prefetch = 0 : i64, scratch_operands = 0 : i64, tpu.core_type = #tpu.core_type<tc>, window_params = [{transform_indices = @transform_0, window_bounds = array<i64: 1, 18, 144>}, {pipeline_mode = #tpu.pipeline_mode<synchronous>, transform_indices = @transform_1, window_bounds = array<i64: 9, 128>}, {transform_indices = @transform_2, window_bounds = array<i64: 1, 16, 128>}, {transform_indices = @transform_3, window_bounds = array<i64: 1, 2, 128>}]} {
    %cst = arith.constant 0.000000e+00 : f32
    %0 = vector.broadcast %cst : f32 to vector<16x128xf32>
    %c0 = arith.constant 0 : index
    %c0_0 = arith.constant 0 : index
    %c0_1 = arith.constant 0 : index
    %1 = vector.load %arg1[%c0, %c0_0, %c0_1] : memref<1x18x144xf32, #tpu.memory_space<vmem>>, vector<1x16x128xf32>
    %2 = vector.shape_cast %1 : vector<1x16x128xf32> to vector<16x128xf32>
    %c0_2 = arith.constant 0 : index
    %c0_3 = arith.constant 0 : index
    %3 = vector.load %arg2[%c0_2, %c0_3] : memref<9x128xf32, #tpu.memory_space<vmem>>, vector<1x128xf32>
    %4 = vector.broadcast %3 : vector<1x128xf32> to vector<16x128xf32>
    %5 = arith.mulf %2, %4 : vector<16x128xf32>
    %6 = arith.addf %0, %5 : vector<16x128xf32>
    %c0_4 = arith.constant 0 : index
    %c0_5 = arith.constant 0 : index
    %c8 = arith.constant 8 : index
    %7 = vector.load %arg1[%c0_4, %c0_5, %c8] : memref<1x18x144xf32, #tpu.memory_space<vmem>>, vector<1x16x128xf32>
    %8 = vector.shape_cast %7 : vector<1x16x128xf32> to vector<16x128xf32>
    %c1 = arith.constant 1 : index
    %c0_6 = arith.constant 0 : index
    %9 = vector.load %arg2[%c1, %c0_6] : memref<9x128xf32, #tpu.memory_space<vmem>>, vector<1x128xf32>
    %10 = vector.broadcast %9 : vector<1x128xf32> to vector<16x128xf32>
    %11 = arith.mulf %8, %10 : vector<16x128xf32>
    %12 = arith.addf %6, %11 : vector<16x128xf32>
    %c0_7 = arith.constant 0 : index
    %c0_8 = arith.constant 0 : index
    %c16 = arith.constant 16 : index
    %13 = vector.load %arg1[%c0_7, %c0_8, %c16] : memref<1x18x144xf32, #tpu.memory_space<vmem>>, vector<1x16x128xf32>
    %14 = vector.shape_cast %13 : vector<1x16x128xf32> to vector<16x128xf32>
    %c2 = arith.constant 2 : index
    %c0_9 = arith.constant 0 : index
    %15 = vector.load %arg2[%c2, %c0_9] : memref<9x128xf32, #tpu.memory_space<vmem>>, vector<1x128xf32>
    %16 = vector.broadcast %15 : vector<1x128xf32> to vector<16x128xf32>
    %17 = arith.mulf %14, %16 : vector<16x128xf32>
    %18 = arith.addf %12, %17 : vector<16x128xf32>
    %c0_10 = arith.constant 0 : index
    %c1_11 = arith.constant 1 : index
    %c0_12 = arith.constant 0 : index
    %19 = vector.load %arg1[%c0_10, %c1_11, %c0_12] : memref<1x18x144xf32, #tpu.memory_space<vmem>>, vector<1x16x128xf32>
    %20 = vector.shape_cast %19 : vector<1x16x128xf32> to vector<16x128xf32>
    %c3 = arith.constant 3 : index
    %c0_13 = arith.constant 0 : index
    %21 = vector.load %arg2[%c3, %c0_13] : memref<9x128xf32, #tpu.memory_space<vmem>>, vector<1x128xf32>
    %22 = vector.broadcast %21 : vector<1x128xf32> to vector<16x128xf32>
    %23 = arith.mulf %20, %22 : vector<16x128xf32>
    %24 = arith.addf %18, %23 : vector<16x128xf32>
    %c0_14 = arith.constant 0 : index
    %c1_15 = arith.constant 1 : index
    %c8_16 = arith.constant 8 : index
    %25 = vector.load %arg1[%c0_14, %c1_15, %c8_16] : memref<1x18x144xf32, #tpu.memory_space<vmem>>, vector<1x16x128xf32>
    %26 = vector.shape_cast %25 : vector<1x16x128xf32> to vector<16x128xf32>
    %c4 = arith.constant 4 : index
    %c0_17 = arith.constant 0 : index
    %27 = vector.load %arg2[%c4, %c0_17] : memref<9x128xf32, #tpu.memory_space<vmem>>, vector<1x128xf32>
    %28 = vector.broadcast %27 : vector<1x128xf32> to vector<16x128xf32>
    %29 = arith.mulf %26, %28 : vector<16x128xf32>
    %30 = arith.addf %24, %29 : vector<16x128xf32>
    %c0_18 = arith.constant 0 : index
    %c1_19 = arith.constant 1 : index
    %c16_20 = arith.constant 16 : index
    %31 = vector.load %arg1[%c0_18, %c1_19, %c16_20] : memref<1x18x144xf32, #tpu.memory_space<vmem>>, vector<1x16x128xf32>
    %32 = vector.shape_cast %31 : vector<1x16x128xf32> to vector<16x128xf32>
    %c5 = arith.constant 5 : index
    %c0_21 = arith.constant 0 : index
    %33 = vector.load %arg2[%c5, %c0_21] : memref<9x128xf32, #tpu.memory_space<vmem>>, vector<1x128xf32>
    %34 = vector.broadcast %33 : vector<1x128xf32> to vector<16x128xf32>
    %35 = arith.mulf %32, %34 : vector<16x128xf32>
    %36 = arith.addf %30, %35 : vector<16x128xf32>
    %c0_22 = arith.constant 0 : index
    %c2_23 = arith.constant 2 : index
    %c0_24 = arith.constant 0 : index
    %37 = vector.load %arg1[%c0_22, %c2_23, %c0_24] : memref<1x18x144xf32, #tpu.memory_space<vmem>>, vector<1x16x128xf32>
    %38 = vector.shape_cast %37 : vector<1x16x128xf32> to vector<16x128xf32>
    %c6 = arith.constant 6 : index
    %c0_25 = arith.constant 0 : index
    %39 = vector.load %arg2[%c6, %c0_25] : memref<9x128xf32, #tpu.memory_space<vmem>>, vector<1x128xf32>
    %40 = vector.broadcast %39 : vector<1x128xf32> to vector<16x128xf32>
    %41 = arith.mulf %38, %40 : vector<16x128xf32>
    %42 = arith.addf %36, %41 : vector<16x128xf32>
    %c0_26 = arith.constant 0 : index
    %c2_27 = arith.constant 2 : index
    %c8_28 = arith.constant 8 : index
    %43 = vector.load %arg1[%c0_26, %c2_27, %c8_28] : memref<1x18x144xf32, #tpu.memory_space<vmem>>, vector<1x16x128xf32>
    %44 = vector.shape_cast %43 : vector<1x16x128xf32> to vector<16x128xf32>
    %c7 = arith.constant 7 : index
    %c0_29 = arith.constant 0 : index
    %45 = vector.load %arg2[%c7, %c0_29] : memref<9x128xf32, #tpu.memory_space<vmem>>, vector<1x128xf32>
    %46 = vector.broadcast %45 : vector<1x128xf32> to vector<16x128xf32>
    %47 = arith.mulf %44, %46 : vector<16x128xf32>
    %48 = arith.addf %42, %47 : vector<16x128xf32>
    %c0_30 = arith.constant 0 : index
    %c2_31 = arith.constant 2 : index
    %c16_32 = arith.constant 16 : index
    %49 = vector.load %arg1[%c0_30, %c2_31, %c16_32] : memref<1x18x144xf32, #tpu.memory_space<vmem>>, vector<1x16x128xf32>
    %50 = vector.shape_cast %49 : vector<1x16x128xf32> to vector<16x128xf32>
    %c8_33 = arith.constant 8 : index
    %c0_34 = arith.constant 0 : index
    %51 = vector.load %arg2[%c8_33, %c0_34] : memref<9x128xf32, #tpu.memory_space<vmem>>, vector<1x128xf32>
    %52 = vector.broadcast %51 : vector<1x128xf32> to vector<16x128xf32>
    %53 = arith.mulf %50, %52 : vector<16x128xf32>
    %54 = arith.addf %48, %53 : vector<16x128xf32>
    %c0_35 = arith.constant 0 : index
    %c0_36 = arith.constant 0 : index
    %c0_37 = arith.constant 0 : index
    %55 = vector.load %arg3[%c0_35, %c0_36, %c0_37] : memref<1x16x128xf32, #tpu.memory_space<vmem>>, vector<1x16x128xf32>
    %56 = vector.shape_cast %55 : vector<1x16x128xf32> to vector<16x128xf32>
    %57 = vector.shape_cast %54 : vector<16x128xf32> to vector<1x16x128xf32>
    tpu.vector_store %arg3[%c0_35, %c0_36, %c0_37], %57 {strides = array<i32>} : memref<1x16x128xf32, #tpu.memory_space<vmem>>, vector<1x16x128xf32>,
    %cst_38 = arith.constant dense<0.000000e+00> : vector<128xf32>
    %58 = vector.multi_reduction <add>, %54, %cst_38 [0] : vector<16x128xf32> to vector<128xf32>
    %59 = vector.shape_cast %58 : vector<128xf32> to vector<1x128xf32>
    %c0_39 = arith.constant 0 : index
    %c0_40 = arith.constant 0 : index
    %c0_41 = arith.constant 0 : index
    %60 = vector.load %arg4[%c0_39, %c0_40, %c0_41] : memref<1x2x128xf32, #tpu.memory_space<vmem>>, vector<1x1x128xf32>
    %61 = vector.shape_cast %60 : vector<1x1x128xf32> to vector<1x128xf32>
    %62 = vector.shape_cast %59 : vector<1x128xf32> to vector<1x1x128xf32>
    tpu.vector_store %arg4[%c0_39, %c0_40, %c0_41], %62 {strides = array<i32>} : memref<1x2x128xf32, #tpu.memory_space<vmem>>, vector<1x1x128xf32>,
    %63 = arith.mulf %54, %54 : vector<16x128xf32>
    %cst_42 = arith.constant dense<0.000000e+00> : vector<128xf32>
    %64 = vector.multi_reduction <add>, %63, %cst_42 [0] : vector<16x128xf32> to vector<128xf32>
    %65 = vector.shape_cast %64 : vector<128xf32> to vector<1x128xf32>
    %c0_43 = arith.constant 0 : index
    %c1_44 = arith.constant 1 : index
    %c0_45 = arith.constant 0 : index
    %66 = vector.load %arg4[%c0_43, %c1_44, %c0_45] : memref<1x2x128xf32, #tpu.memory_space<vmem>>, vector<1x1x128xf32>
    %67 = vector.shape_cast %66 : vector<1x1x128xf32> to vector<1x128xf32>
    %68 = vector.shape_cast %65 : vector<1x128xf32> to vector<1x1x128xf32>
    tpu.vector_store %arg4[%c0_43, %c1_44, %c0_45], %68 {strides = array<i32>} : memref<1x2x128xf32, #tpu.memory_space<vmem>>, vector<1x1x128xf32>,
    return
  }
  func.func @transform_0(%arg0: i32) -> (i32, i32, i32) {
    %c0_i32 = arith.constant 0 : i32
    %c0_i32_0 = arith.constant 0 : i32
    %c0_i32_1 = arith.constant 0 : i32
    return %arg0, %c0_i32, %c0_i32_0 : i32, i32, i32
  }
  func.func @transform_1(%arg0: i32) -> (i32, i32) {
    %c0_i32 = arith.constant 0 : i32
    %c0_i32_0 = arith.constant 0 : i32
    %c0_i32_1 = arith.constant 0 : i32
    return %c0_i32, %c0_i32_0 : i32, i32
  }
  func.func @transform_2(%arg0: i32) -> (i32, i32, i32) {
    %c0_i32 = arith.constant 0 : i32
    %c0_i32_0 = arith.constant 0 : i32
    %c0_i32_1 = arith.constant 0 : i32
    return %arg0, %c0_i32, %c0_i32_0 : i32, i32, i32
  }
  func.func @transform_3(%arg0: i32) -> (i32, i32, i32) {
    %c0_i32 = arith.constant 0 : i32
    %c0_i32_0 = arith.constant 0 : i32
    %c0_i32_1 = arith.constant 0 : i32
    return %arg0, %c0_i32, %c0_i32_0 : i32, i32, i32
  }
}

module attributes {stable_mosaic.version = 11 : i64} {
  func.func @_fused_pw_kernel(%arg0: i32, %arg1: memref<32x128xf32, #tpu.memory_space<vmem>>, %arg2: memref<1x128xf32, #tpu.memory_space<vmem>>, %arg3: memref<1x128xf32, #tpu.memory_space<vmem>>, %arg4: memref<128x256xf32, #tpu.memory_space<vmem>>, %arg5: memref<1x256xf32, #tpu.memory_space<vmem>>, %arg6: memref<1x256xf32, #tpu.memory_space<vmem>>, %arg7: memref<32x256xf32, #tpu.memory_space<vmem>>) attributes {dimension_semantics = [#tpu.dimension_semantics<parallel>], iteration_bounds = array<i64: 1>, scalar_prefetch = 0 : i64, scratch_operands = 0 : i64, tpu.core_type = #tpu.core_type<tc>, window_params = [{transform_indices = @transform_0, window_bounds = array<i64: 32, 128>}, {pipeline_mode = #tpu.pipeline_mode<synchronous>, transform_indices = @transform_1, window_bounds = array<i64: 1, 128>}, {pipeline_mode = #tpu.pipeline_mode<synchronous>, transform_indices = @transform_2, window_bounds = array<i64: 1, 128>}, {pipeline_mode = #tpu.pipeline_mode<synchronous>, transform_indices = @transform_3, window_bounds = array<i64: 128, 256>}, {pipeline_mode = #tpu.pipeline_mode<synchronous>, transform_indices = @transform_4, window_bounds = array<i64: 1, 256>}, {pipeline_mode = #tpu.pipeline_mode<synchronous>, transform_indices = @transform_5, window_bounds = array<i64: 1, 256>}, {transform_indices = @transform_6, window_bounds = array<i64: 32, 256>}]} {
    %c0 = arith.constant 0 : index
    %c0_0 = arith.constant 0 : index
    %0 = vector.load %arg1[%c0, %c0_0] : memref<32x128xf32, #tpu.memory_space<vmem>>, vector<32x128xf32>
    %c0_1 = arith.constant 0 : index
    %c0_2 = arith.constant 0 : index
    %1 = vector.load %arg2[%c0_1, %c0_2] : memref<1x128xf32, #tpu.memory_space<vmem>>, vector<1x128xf32>
    %2 = vector.broadcast %1 : vector<1x128xf32> to vector<32x128xf32>
    %3 = arith.mulf %0, %2 : vector<32x128xf32>
    %c0_3 = arith.constant 0 : index
    %c0_4 = arith.constant 0 : index
    %4 = vector.load %arg3[%c0_3, %c0_4] : memref<1x128xf32, #tpu.memory_space<vmem>>, vector<1x128xf32>
    %5 = vector.broadcast %4 : vector<1x128xf32> to vector<32x128xf32>
    %6 = arith.addf %3, %5 : vector<32x128xf32>
    %cst = arith.constant 0.000000e+00 : f32
    %7 = vector.broadcast %cst : f32 to vector<32x128xf32>
    %8 = arith.maximumf %6, %7 : vector<32x128xf32>
    %c0_5 = arith.constant 0 : index
    %c0_6 = arith.constant 0 : index
    %9 = vector.load %arg4[%c0_5, %c0_6] : memref<128x256xf32, #tpu.memory_space<vmem>>, vector<128x256xf32>
    %cst_7 = arith.constant dense<0.000000e+00> : vector<32x256xf32>
    %10 = tpu.matmul %8, %9, %cst_7 {dimension_numbers = #tpu.dot_dimension_numbers<[1], [0], [0], [1], [0, 0, 1, 1], [], []>} : vector<32x128xf32>, vector<128x256xf32>, vector<32x256xf32> -> vector<32x256xf32>
    %c0_8 = arith.constant 0 : index
    %c0_9 = arith.constant 0 : index
    %11 = vector.load %arg5[%c0_8, %c0_9] : memref<1x256xf32, #tpu.memory_space<vmem>>, vector<1x256xf32>
    %12 = vector.broadcast %11 : vector<1x256xf32> to vector<32x256xf32>
    %13 = arith.mulf %10, %12 : vector<32x256xf32>
    %c0_10 = arith.constant 0 : index
    %c0_11 = arith.constant 0 : index
    %14 = vector.load %arg6[%c0_10, %c0_11] : memref<1x256xf32, #tpu.memory_space<vmem>>, vector<1x256xf32>
    %15 = vector.broadcast %14 : vector<1x256xf32> to vector<32x256xf32>
    %16 = arith.addf %13, %15 : vector<32x256xf32>
    %cst_12 = arith.constant 0.000000e+00 : f32
    %17 = vector.broadcast %cst_12 : f32 to vector<32x256xf32>
    %18 = arith.maximumf %16, %17 : vector<32x256xf32>
    %c0_13 = arith.constant 0 : index
    %c0_14 = arith.constant 0 : index
    %19 = vector.load %arg7[%c0_13, %c0_14] : memref<32x256xf32, #tpu.memory_space<vmem>>, vector<32x256xf32>
    tpu.vector_store %arg7[%c0_13, %c0_14], %18 {strides = array<i32>} : memref<32x256xf32, #tpu.memory_space<vmem>>, vector<32x256xf32>,
    return
  }
  func.func @transform_0(%arg0: i32) -> (i32, i32) {
    %c0_i32 = arith.constant 0 : i32
    %c0_i32_0 = arith.constant 0 : i32
    return %arg0, %c0_i32 : i32, i32
  }
  func.func @transform_1(%arg0: i32) -> (i32, i32) {
    %c0_i32 = arith.constant 0 : i32
    %c0_i32_0 = arith.constant 0 : i32
    %c0_i32_1 = arith.constant 0 : i32
    return %c0_i32, %c0_i32_0 : i32, i32
  }
  func.func @transform_2(%arg0: i32) -> (i32, i32) {
    %c0_i32 = arith.constant 0 : i32
    %c0_i32_0 = arith.constant 0 : i32
    %c0_i32_1 = arith.constant 0 : i32
    return %c0_i32, %c0_i32_0 : i32, i32
  }
  func.func @transform_3(%arg0: i32) -> (i32, i32) {
    %c0_i32 = arith.constant 0 : i32
    %c0_i32_0 = arith.constant 0 : i32
    %c0_i32_1 = arith.constant 0 : i32
    return %c0_i32, %c0_i32_0 : i32, i32
  }
  func.func @transform_4(%arg0: i32) -> (i32, i32) {
    %c0_i32 = arith.constant 0 : i32
    %c0_i32_0 = arith.constant 0 : i32
    %c0_i32_1 = arith.constant 0 : i32
    return %c0_i32, %c0_i32_0 : i32, i32
  }
  func.func @transform_5(%arg0: i32) -> (i32, i32) {
    %c0_i32 = arith.constant 0 : i32
    %c0_i32_0 = arith.constant 0 : i32
    %c0_i32_1 = arith.constant 0 : i32
    return %c0_i32, %c0_i32_0 : i32, i32
  }
  func.func @transform_6(%arg0: i32) -> (i32, i32) {
    %c0_i32 = arith.constant 0 : i32
    %c0_i32_0 = arith.constant 0 : i32
    return %arg0, %c0_i32 : i32, i32
  }
}

</mosaic_0001>

<bundles_post_ra>
// kernel: tile.27
= control target key start
LH: loop header
LB: loop body
LE: loop exit
PB: predicated region body
PF: predicated region fallthrough
CT: control target
= control target key end

     0   :  { %vm6_vm0 = vcmask 1043458   ;;  %vm10_vm1 = vcmask 1045508   ;;  %vm14_vm2 = vcmask 1047558   ;;  %s24_s6 = smov 3  ;;  %s27_s7 = smov 12  ;;  %vm16_vm3 = vcmask 64512   ;;  %s974_s0 = inlined_call_operand.vmem [shape: f32[9,16,8], index: 0, kind: input, shape index: {}]   ;;  %s975_s1 = inlined_call_operand.vmem [shape: f32[9,128], index: 1, kind: output, shape index: {}]  }
   0x1   :  { %v460_v0 = vld [vmem:[%s974_s0 + $0xf] ss:$16 sm:%s24_s6]   ;;  %s32_s12 = smov 48  ;;  %s37_s13 = smov 192  ;;  %v470_v26 = vld [vmem:[%s974_s0 + $0x8e] sm:$0x1]  }
   0x2   :  { %v461_v1 = vld [vmem:[%s974_s0 + $0xf] ss:$16 sm:%s27_s7]   ;;  %s53_s18 = smov 3  ;;  %s56_s21 = smov 12  ;;  %v476_v32 = vld [vmem:[%s974_s0 + $0x8d] sm:$0x1]  }
   0x3   :  { %v30_v2 = vsel %vm6_vm0, %v461_v1, %v460_v0  ;;  %v462_v3 = vld [vmem:[%s974_s0 + $0xf] ss:$16 sm:%s32_s12]   ;;  %v466_v6 = vld [vmem:[%s974_s0 + $0xe] ss:$16 sm:%s53_s18]   ;;  %s61_s22 = smov 48  ;;  %s66_s27 = smov 192 }
   0x4   :  { %v463_v4 = vld [vmem:[%s974_s0 + $0xf] ss:$16 sm:%s37_s13]   ;;  %v35_v5 = vsel %vm10_vm1, %v462_v3, %v30_v2  ;;  %v467_v8 = vld [vmem:[%s974_s0 + $0xe] ss:$16 sm:%s56_s21]   ;;  %s565_s28 = smov 120   ;;  %s111_s2 = smov 3 }
   0x5   :  { %v40_v7 = vsel %vm14_vm2, %v463_v4, %v35_v5  ;;  %v468_v9 = vld [vmem:[%s974_s0 + $0xe] ss:$16 sm:%s61_s22]   ;;  %v59_v10 = vsel %vm6_vm0, %v467_v8, %v466_v6  ;;  %s114_s3 = smov 12  ;;  %v478_v14 = vld [vmem:[%s974_s0 + $0xc] ss:$16 sm:%s111_s2]   ;;  %s119_s6 = smov 48 }
   0x6   :  { %41 = vrot.lane.b32.xlu0 %v40_v7, %s565_s28  ;;  %v469_v11 = vld [vmem:[%s974_s0 + $0xe] ss:$16 sm:%s66_s27]   ;;  %v64_v12 = vsel %vm10_vm1, %v468_v9, %v59_v10  ;;  %s566_s7 = smov 112   ;;  %v464_v15 = vld [vmem:[%s974_s0 + $0x8f] sm:$0x1]   ;;  %s82_s12 = smov 3 }
   0x7   :  { %v69_v13 = vsel %vm14_vm2, %v469_v11, %v64_v12  ;;  %v479_v16 = vld [vmem:[%s974_s0 + $0xc] ss:$16 sm:%s114_s3]   ;;  %s85_s13 = smov 12  ;;  %v472_v17 = vld [vmem:[%s974_s0 + $0xd] ss:$16 sm:%s82_s12]   ;;  %s90_s18 = smov 48 }
   0x8   :  { %70 = vrot.lane.b32.xlu1 %v69_v13, %s566_s7  ;;  %v473_v18 = vld [vmem:[%s974_s0 + $0xd] ss:$16 sm:%s85_s13]   ;;  %s95_s19 = smov 192  ;;  %v117_v23 = vsel %vm6_vm0, %v479_v16, %v478_v14  ;;  %s124_s26 = smov 192  ;;  %v482_v37 = vld [vmem:[%s974_s0 + $0x8c] sm:$0x1]  }
   0x9   :  { %v88_v19 = vsel %vm6_vm0, %v473_v18, %v472_v17  ;;  %v474_v20 = vld [vmem:[%s974_s0 + $0xd] ss:$16 sm:%s90_s18]   ;;  %v480_v24 = vld [vmem:[%s974_s0 + $0xc] ss:$16 sm:%s119_s6]   ;;  %s567_s29 = smov 104   ;;  %s169_s3 = smov 3 }
   0xa   :  { %v475_v21 = vld [vmem:[%s974_s0 + $0xd] ss:$16 sm:%s95_s19]   ;;  %v93_v22 = vsel %vm10_vm1, %v474_v20, %v88_v19  ;;  %v122_v27 = vsel %vm10_vm1, %v480_v24, %v117_v23  ;;  %v481_v28 = vld [vmem:[%s974_s0 + $0xc] ss:$16 sm:%s124_s26]   ;;  %s140_s4 = smov 3  ;;  %s143_s5 = smov 12 }
   0xb   :  { %v98_v25 = vsel %vm14_vm2, %v475_v21, %v93_v22  ;;  %s172_s6 = smov 12  ;;  %v484_v29 = vld [vmem:[%s974_s0 + $0xb] ss:$16 sm:%s140_s4]   ;;  %s148_s11 = smov 48  ;;  %v127_v31 = vsel %vm14_vm2, %v481_v28, %v122_v27  ;;  %v490_v33 = vld [vmem:[%s974_s0 + $0xa] ss:$16 sm:%s169_s3]  }
   0xc   :  { %99 = vrot.lane.b32.xlu2 %v98_v25, %s567_s29  ;;  %v485_v30 = vld [vmem:[%s974_s0 + $0xb] ss:$16 sm:%s143_s5]   ;;  %s177_s18 = smov 48  ;;  %s153_s21 = smov 192  ;;  %v494_v56 = vld [vmem:[%s974_s0 + $0x8a] sm:$0x1]  }
   0xd   :  { %v491_v34 = vld [vmem:[%s974_s0 + $0xa] ss:$16 sm:%s172_s6]   ;;  %v146_v35 = vsel %vm6_vm0, %v485_v30, %v484_v29  ;;  %v486_v36 = vld [vmem:[%s974_s0 + $0xb] ss:$16 sm:%s148_s11]   ;;  %s568_s22 = smov 96   ;;  %s198_s25 = smov 3 }
   0xe   :  { %47 = vrot.lane.b32.xlu0 %v464_v15, %s565_s28  ;;  %s201_s26 = smov 12  ;;  %v175_v38 = vsel %vm6_vm0, %v491_v34, %v490_v33  ;;  %v492_v39 = vld [vmem:[%s974_s0 + $0xa] ss:$16 sm:%s177_s18]   ;;  %v151_v40 = vsel %vm10_vm1, %v486_v36, %v146_v35  ;;  %v488_v44 = vld [vmem:[%s974_s0 + $0x8b] sm:$0x1]   ;;  %s211_s14 = smov 192 }
   0xf   :  { %v487_v41 = vld [vmem:[%s974_s0 + $0xb] ss:$16 sm:%s153_s21]   ;;  %v496_v42 = vld [vmem:[%s974_s0 + $0x9] ss:$16 sm:%s198_s25]   ;;  %v180_v45 = vsel %vm10_vm1, %v492_v39, %v175_v38  ;;  %s569_s15 = smov 88   ;;  %s227_s16 = smov 3 }
  0x10   :  { %76 = vrot.lane.b32.xlu1 %v470_v26, %s566_s7  ;;  %v497_v43 = vld [vmem:[%s974_s0 + $0x9] ss:$16 sm:%s201_s26]   ;;  %s206_s7 = smov 48  ;;  %v156_v47 = vsel %vm14_vm2, %v487_v41, %v151_v40  ;;  %s230_s17 = smov 12  ;;  %v506_v4 = vld [vmem:[%s974_s0 + $0x88] sm:$0x1]  }
  0x11   :  { %v204_v48 = vsel %vm6_vm0, %v497_v43, %v496_v42  ;;  %v498_v49 = vld [vmem:[%s974_s0 + $0x9] ss:$16 sm:%s206_s7]   ;;  %s570_s20 = smov 80   ;;  %s256_s21 = smov 3  ;;  %v502_v53 = vld [vmem:[%s974_s0 + $0x8] ss:$16 sm:%s227_s16]  }
  0x12   :  { %v209_v51 = vsel %vm10_vm1, %v498_v49, %v204_v48  ;;  %v499_v52 = vld [vmem:[%s974_s0 + $0x9] ss:$16 sm:%s211_s14]   ;;  %v503_v54 = vld [vmem:[%s974_s0 + $0x8] ss:$16 sm:%s230_s17]   ;;  %s235_s27 = smov 48  ;;  %s264_s5 = smov 48 }
  0x13   :  { %v214_v55 = vsel %vm14_vm2, %v499_v52, %v209_v51  ;;  %v508_v57 = vld [vmem:[%s974_s0 + $0x7] ss:$16 sm:%s256_s21]   ;;  %v233_v59 = vsel %vm6_vm0, %v503_v54, %v502_v53  ;;  %v504_v60 = vld [vmem:[%s974_s0 + $0x8] ss:$16 sm:%s235_s27]   ;;  %s240_s8 = smov 192  ;;  %s571_s9 = smov 72  }
  0x14   :  { %105 = vrot.lane.b32.xlu2 %v476_v32, %s567_s29  ;;  %s182_s29 = smov 192  ;;  %v500_v61 = vld [vmem:[%s974_s0 + $0x89] sm:$0x1]   ;;  %s285_s12 = smov 3  ;;  %v510_v63 = vld [vmem:[%s974_s0 + $0x7] ss:$16 sm:%s264_s5]   ;;  %v238_v0 = vsel %vm10_vm1, %v504_v60, %v233_v59 }
  0x15   :  { %v493_v46 = vld [vmem:[%s974_s0 + $0xa] ss:$16 sm:%s182_s29]   ;;  %s288_s13 = smov 12  ;;  %s269_s16 = smov 192  ;;  %v505_v1 = vld [vmem:[%s974_s0 + $0x8] ss:$16 sm:%s240_s8]  }
  0x16   :  { %128 = vrot.lane.b32.xlu0 %v127_v31, %s568_s22  ;;  %v185_v50 = vsel %vm14_vm2, %v493_v46, %v180_v45  ;;  %v514_v2 = vld [vmem:[%s974_s0 + $0x6] ss:$16 sm:%s285_s12]   ;;  %s293_s23 = smov 48  ;;  %v243_v7 = vsel %vm14_vm2, %v505_v1, %v238_v0  ;;  %s298_s30 = smov 192  ;;  %v512_v16 = vld [vmem:[%s974_s0 + $0x87] sm:$0x1]  }
  0x17   :  { %v515_v3 = vld [vmem:[%s974_s0 + $0x6] ss:$16 sm:%s288_s13]   ;;  %v511_v6 = vld [vmem:[%s974_s0 + $0x7] ss:$16 sm:%s269_s16]   ;;  %s572_s2 = smov 64   ;;  %s314_s3 = smov 3 }
  0x18   :  { %134 = vrot.lane.b32.xlu1 %v482_v37, %s568_s22  ;;  %s259_s22 = smov 12  ;;  %v291_v8 = vsel %vm6_vm0, %v515_v3, %v514_v2  ;;  %v516_v9 = vld [vmem:[%s974_s0 + $0x6] ss:$16 sm:%s293_s23]   ;;  %s317_s4 = smov 12  ;;  %v524_v28 = vld [vmem:[%s974_s0 + $0x85] sm:$0x1]  }
  0x19   :  { %v509_v58 = vld [vmem:[%s974_s0 + $0x7] ss:$16 sm:%s259_s22]   ;;  %v296_v11 = vsel %vm10_vm1, %v516_v9, %v291_v8  ;;  %v517_v12 = vld [vmem:[%s974_s0 + $0x6] ss:$16 sm:%s298_s30]   ;;  %s573_s7 = smov 56   ;;  %s343_s8 = smov 3 }
  0x1a   :  { %v262_v62 = vsel %vm6_vm0, %v509_v58, %v508_v57  ;;  %v520_v13 = vld [vmem:[%s974_s0 + $0x5] ss:$16 sm:%s314_s3]   ;;  %s322_s14 = smov 48  ;;  %v301_v15 = vsel %vm14_vm2, %v517_v12, %v296_v11  ;;  %v526_v17 = vld [vmem:[%s974_s0 + $0x4] ss:$16 sm:%s343_s8]   ;;  %s351_s21 = smov 48 }
  0x1b   :  { %v267_v5 = vsel %vm10_vm1, %v510_v63, %v262_v62  ;;  %v521_v14 = vld [vmem:[%s974_s0 + $0x5] ss:$16 sm:%s317_s4]   ;;  %s327_s24 = smov 192  ;;  %s574_s25 = smov 48   ;;  %v518_v21 = vld [vmem:[%s974_s0 + $0x86] sm:$0x1]  }
  0x1c   :  { %157 = vrot.lane.b32.xlu2 %v156_v47, %s569_s15  ;;  %v272_v10 = vsel %vm14_vm2, %v511_v6, %v267_v5  ;;  %v320_v19 = vsel %vm6_vm0, %v521_v14, %v520_v13  ;;  %v522_v20 = vld [vmem:[%s974_s0 + $0x5] ss:$16 sm:%s322_s14]   ;;  %s372_s28 = smov 3  ;;  %s375_s29 = smov 12  ;;  %v530_v40 = vld [vmem:[%s974_s0 + $0x84] sm:$0x1]  }
  0x1d   :  { %v528_v23 = vld [vmem:[%s974_s0 + $0x4] ss:$16 sm:%s351_s21]   ;;  %s356_s3 = smov 192  ;;  %v325_v24 = vsel %vm10_vm1, %v522_v20, %v320_v19  ;;  %v523_v25 = vld [vmem:[%s974_s0 + $0x5] ss:$16 sm:%s327_s24]   ;;  %s380_s10 = smov 48 }
  0x1e   :  { %163 = vrot.lane.b32.xlu0 %v488_v44, %s569_s15  ;;  %v532_v26 = vld [vmem:[%s974_s0 + $0x3] ss:$16 sm:%s372_s28]   ;;  %v330_v31 = vsel %vm14_vm2, %v523_v25, %v325_v24  ;;  %s385_s17 = smov 192  ;;  %s575_s18 = smov 40   ;;  %v458_v63 = vld [vmem:[%s974_s0 + $0x80] sm:$0x1]  }
  0x1f   :  { %v533_v27 = vld [vmem:[%s974_s0 + $0x3] ss:$16 sm:%s375_s29]   ;;  %v529_v30 = vld [vmem:[%s974_s0 + $0x4] ss:$16 sm:%s356_s3]   ;;  %s401_s19 = smov 3  ;;  %s576_s23 = smov 32  }
  0x20   :  { %186 = vrot.lane.b32.xlu1 %v185_v50, %s570_s20  ;;  %v378_v32 = vsel %vm6_vm0, %v533_v27, %v532_v26  ;;  %v534_v33 = vld [vmem:[%s974_s0 + $0x3] ss:$16 sm:%s380_s10]   ;;  %s430_s24 = smov 3  ;;  %s409_s30 = smov 48  ;;  %v542_v50 = vld [vmem:[%s974_s0 + $0x82] sm:$0x1]  }
  0x21   :  { %v383_v35 = vsel %vm10_vm1, %v534_v33, %v378_v32  ;;  %v535_v36 = vld [vmem:[%s974_s0 + $0x3] ss:$16 sm:%s385_s17]   ;;  %v538_v37 = vld [vmem:[%s974_s0 + $0x2] ss:$16 sm:%s401_s19]   ;;  %s438_s8 = smov 48  ;;  %s414_s11 = smov 192 }
  0x22   :  { %v388_v39 = vsel %vm14_vm2, %v535_v36, %v383_v35  ;;  %v544_v41 = vld [vmem:[%s974_s0 + $0x1] ss:$16 sm:%s430_s24]   ;;  %v540_v44 = vld [vmem:[%s974_s0 + $0x2] ss:$16 sm:%s409_s30]   ;;  %s577_s12 = smov 24   ;;  %s443_s17 = smov 192 }
  0x23   :  { %v536_v45 = vld [vmem:[%s974_s0 + $0x83] sm:$0x1]   ;;  %v546_v47 = vld [vmem:[%s974_s0 + $0x1] ss:$16 sm:%s438_s8]   ;;  %s578_s24 = smov 16   ;;  %s2_s28 = smov 3 }
  0x24   :  { %192 = vrot.lane.b32.xlu2 %v494_v56, %s570_s20  ;;  %s404_s20 = smov 12  ;;  %v541_v49 = vld [vmem:[%s974_s0 + $0x2] ss:$16 sm:%s414_s11]   ;;  %s4_s29 = smov 12  ;;  %459 = vst.msk [vmem:[%s975_s1 + $0x8] sm:$0x1] %vm16_vm3, %v458_v63  }
  0x25   :  { %v539_v38 = vld [vmem:[%s974_s0 + $0x2] ss:$16 sm:%s404_s20]   ;;  %v547_v52 = vld [vmem:[%s974_s0 + $0x1] ss:$16 sm:%s443_s17]   ;;  %s8_s30 = smov 48  ;;  %vm43_vm4 = vcmask 1048512  }
  0x26   :  { %215 = vrot.lane.b32.xlu0 %v214_v55, %s571_s9  ;;  %v407_v43 = vsel %vm6_vm0, %v539_v38, %v538_v37  ;;  %v548_v55 = vld [vmem:[%s974_s0 + $0x81] sm:$0x1]   ;;  %v3_v56 = vld [vmem:[%s974_s0] ss:$16 sm:%s2_s28]   ;;  %vm72_vm5 = vcmask 982912   ;;  %vm101_vm6 = vcmask 917312  }
  0x27   :  { %v412_v48 = vsel %vm10_vm1, %v540_v44, %v407_v43  ;;  %v5_v57 = vld [vmem:[%s974_s0] ss:$16 sm:%s4_s29]   ;;  %vm130_vm7 = vcmask 851712   ;;  %vm159_vm8 = vcmask 786112   ;;  %vm188_vm9 = vcmask 720512  }
  0x28   :  { %221 = vrot.lane.b32.xlu1 %v500_v61, %s571_s9  ;;  %s346_s9 = smov 12  ;;  %v417_v53 = vsel %vm14_vm2, %v541_v49, %v412_v48  ;;  %v9_v58 = vld [vmem:[%s974_s0] ss:$16 sm:%s8_s30]   ;;  %v7_v59 = vsel %vm6_vm0, %v5_v57, %v3_v56  ;;  %vm217_vm10 = vcmask 654912   ;;  %vm246_vm11 = vcmask 589312  }
  0x29   :  { %v527_v18 = vld [vmem:[%s974_s0 + $0x4] ss:$16 sm:%s346_s9]   ;;  %v11_v61 = vsel %vm10_vm1, %v9_v58, %v7_v59  ;;  %vm275_vm12 = vcmask 523712   ;;  %vm304_vm13 = vcmask 458112   ;;  %vm333_vm14 = vcmask 392512  }
  0x2a   :  { %v349_v22 = vsel %vm6_vm0, %v527_v18, %v526_v17  ;;  %vm362_vm15 = vcmask 326912  }
  0x2b   :  { %v354_v29 = vsel %vm10_vm1, %v528_v23, %v349_v22 }
  0x2c   :  { %244 = vrot.lane.b32.xlu2 %v243_v7, %s572_s2  ;;  %v359_v34 = vsel %vm14_vm2, %v529_v30, %v354_v29 }
  0x2e   :  { %250 = vrot.lane.b32.xlu0 %v506_v4, %s572_s2  ;;  %s12_s2 = smov 192 }
  0x2f   :  { %v13_v60 = vld [vmem:[%s974_s0] ss:$16 sm:%s12_s2]  }
  0x30   :  { %273 = vrot.lane.b32.xlu1 %v272_v10, %s573_s7  ;;  %v15_v62 = vsel %vm14_vm2, %v13_v60, %v11_v61 }
  0x31   :  { %17 = vst.msk [vmem:[%s975_s1] sm:$0xff] %vm16_vm3, %v15_v62  }
  0x34   :  { %279 = vrot.lane.b32.xlu2 %v512_v16, %s573_s7 }
  0x36   :  { %302 = vrot.lane.b32.xlu0 %v301_v15, %s574_s25 }
  0x38   :  { %308 = vrot.lane.b32.xlu1 %v518_v21, %s574_s25  ;;  %s433_s25 = smov 12 }
  0x39   :  { %v545_v42 = vld [vmem:[%s974_s0 + $0x1] ss:$16 sm:%s433_s25]   ;;  %s579_s25 = smov 8  }
  0x3a   :  { %v436_v46 = vsel %vm6_vm0, %v545_v42, %v544_v41  ;;  %vm391_vm0 = vcmask 261312  }
  0x3b   :  { %v441_v51 = vsel %vm10_vm1, %v546_v47, %v436_v46  ;;  %vm420_vm1 = vcmask 195712  }
  0x3c   :  { %331 = vrot.lane.b32.xlu2 %v330_v31, %s575_s18  ;;  %v446_v54 = vsel %vm14_vm2, %v547_v52, %v441_v51  ;;  %vm449_vm2 = vcmask 130112  }
  0x3e   :  { %337 = vrot.lane.b32.xlu0 %v524_v28, %s575_s18 }
  0x40   :  { %360 = vrot.lane.b32.xlu1 %v359_v34, %s576_s23 }
  0x44   :  { %366 = vrot.lane.b32.xlu2 %v530_v40, %s576_s23 }
  0x46   :  { %389 = vrot.lane.b32.xlu0 %v388_v39, %s577_s12 }
  0x48   :  { %395 = vrot.lane.b32.xlu1 %v536_v45, %s577_s12 }
  0x4c   :  { %418 = vrot.lane.b32.xlu2 %v417_v53, %s578_s24 }
  0x4e   :  { %424 = vrot.lane.b32.xlu0 %v542_v50, %s578_s24 }
  0x50   :  { %447 = vrot.lane.b32.xlu1 %v446_v54, %s579_s25 }
  0x54   :  { %453 = vrot.lane.b32.xlu2 %v548_v55, %s579_s25 }
  0x66   :  { %v100_v0 = vpop.permute.xlu2 %99  }
  0x6e   :  { %v106_v1 = vpop.permute.xlu2 %105  }
  0x76   :  { %v158_v3 = vpop.permute.xlu2 %157  }
  0x78   :  { %v42_v2 = vpop.permute.xlu0 %41  }
  0x79   :  { %44 = vst.msk [vmem:[%s975_s1] sm:$0xff] %vm43_vm4, %v42_v2  }
  0x7a   :  { %v71_v4 = vpop.permute.xlu1 %70  }
  0x7b   :  { %73 = vst.msk [vmem:[%s975_s1] sm:$0xff] %vm72_vm5, %v71_v4  }
  0x7c   :  { %102 = vst.msk [vmem:[%s975_s1] sm:$0xff] %vm101_vm6, %v100_v0  }
  0x7e   :  { %v193_v6 = vpop.permute.xlu2 %192  }
  0x80   :  { %v48_v5 = vpop.permute.xlu0 %47  }
  0x81   :  { %465 = vst.msk [vmem:[%s975_s1 + $0x8] sm:$0x1] %vm43_vm4, %v48_v5  }
  0x82   :  { %v77_v7 = vpop.permute.xlu1 %76  }
  0x83   :  { %471 = vst.msk [vmem:[%s975_s1 + $0x8] sm:$0x1] %vm72_vm5, %v77_v7  }
  0x84   :  { %477 = vst.msk [vmem:[%s975_s1 + $0x8] sm:$0x1] %vm101_vm6, %v106_v1  }
  0x86   :  { %v245_v9 = vpop.permute.xlu2 %244  }
  0x88   :  { %v129_v8 = vpop.permute.xlu0 %128  }
  0x89   :  { %131 = vst.msk [vmem:[%s975_s1] sm:$0xff] %vm130_vm7, %v129_v8  }
  0x8a   :  { %160 = vst.msk [vmem:[%s975_s1] sm:$0xff] %vm159_vm8, %v158_v3   ;;  %v135_v10 = vpop.permute.xlu1 %134  }
  0x8b   :  { %483 = vst.msk [vmem:[%s975_s1 + $0x8] sm:$0x1] %vm130_vm7, %v135_v10  }
  0x8e   :  { %v280_v12 = vpop.permute.xlu2 %279  }
  0x90   :  { %v164_v11 = vpop.permute.xlu0 %163  }
  0x91   :  { %489 = vst.msk [vmem:[%s975_s1 + $0x8] sm:$0x1] %vm159_vm8, %v164_v11  }
  0x92   :  { %495 = vst.msk [vmem:[%s975_s1 + $0x8] sm:$0x1] %vm188_vm9, %v193_v6   ;;  %v187_v13 = vpop.permute.xlu1 %186  }
  0x93   :  { %189 = vst.msk [vmem:[%s975_s1] sm:$0xff] %vm188_vm9, %v187_v13  }
  0x96   :  { %v332_v15 = vpop.permute.xlu2 %331  }
  0x98   :  { %v216_v14 = vpop.permute.xlu0 %215  }
  0x99   :  { %218 = vst.msk [vmem:[%s975_s1] sm:$0xff] %vm217_vm10, %v216_v14  }
  0x9a   :  { %247 = vst.msk [vmem:[%s975_s1] sm:$0xff] %vm246_vm11, %v245_v9   ;;  %v222_v16 = vpop.permute.xlu1 %221  }
  0x9b   :  { %501 = vst.msk [vmem:[%s975_s1 + $0x8] sm:$0x1] %vm217_vm10, %v222_v16  }
  0x9e   :  { %v367_v18 = vpop.permute.xlu2 %366  }
  0xa0   :  { %v251_v17 = vpop.permute.xlu0 %250  }
  0xa1   :  { %507 = vst.msk [vmem:[%s975_s1 + $0x8] sm:$0x1] %vm246_vm11, %v251_v17  }
  0xa2   :  { %513 = vst.msk [vmem:[%s975_s1 + $0x8] sm:$0x1] %vm275_vm12, %v280_v12   ;;  %v274_v19 = vpop.permute.xlu1 %273  }
  0xa3   :  { %276 = vst.msk [vmem:[%s975_s1] sm:$0xff] %vm275_vm12, %v274_v19  }
  0xa6   :  { %v419_v21 = vpop.permute.xlu2 %418  }
  0xa8   :  { %v303_v20 = vpop.permute.xlu0 %302  }
  0xa9   :  { %305 = vst.msk [vmem:[%s975_s1] sm:$0xff] %vm304_vm13, %v303_v20  }
  0xaa   :  { %334 = vst.msk [vmem:[%s975_s1] sm:$0xff] %vm333_vm14, %v332_v15   ;;  %v309_v22 = vpop.permute.xlu1 %308  }
  0xab   :  { %519 = vst.msk [vmem:[%s975_s1 + $0x8] sm:$0x1] %vm304_vm13, %v309_v22  }
  0xae   :  { %v454_v24 = vpop.permute.xlu2 %453  }
  0xb0   :  { %v338_v23 = vpop.permute.xlu0 %337  }
  0xb1   :  { %525 = vst.msk [vmem:[%s975_s1 + $0x8] sm:$0x1] %vm333_vm14, %v338_v23  }
  0xb2   :  { %531 = vst.msk [vmem:[%s975_s1 + $0x8] sm:$0x1] %vm362_vm15, %v367_v18   ;;  %v361_v25 = vpop.permute.xlu1 %360  }
  0xb3   :  { %363 = vst.msk [vmem:[%s975_s1] sm:$0xff] %vm362_vm15, %v361_v25  }
  0xb8   :  { %v390_v26 = vpop.permute.xlu0 %389  }
  0xb9   :  { %392 = vst.msk [vmem:[%s975_s1] sm:$0xff] %vm391_vm0, %v390_v26  }
  0xba   :  { %421 = vst.msk [vmem:[%s975_s1] sm:$0xff] %vm420_vm1, %v419_v21   ;;  %v396_v27 = vpop.permute.xlu1 %395  }
  0xbb   :  { %537 = vst.msk [vmem:[%s975_s1 + $0x8] sm:$0x1] %vm391_vm0, %v396_v27  }
  0xc0   :  { %v425_v28 = vpop.permute.xlu0 %424  }
  0xc1   :  { %543 = vst.msk [vmem:[%s975_s1 + $0x8] sm:$0x1] %vm420_vm1, %v425_v28  }
  0xc2   :  { %549 = vst.msk [vmem:[%s975_s1 + $0x8] sm:$0x1] %vm449_vm2, %v454_v24   ;;  %v448_v29 = vpop.permute.xlu1 %447  }
  0xc3   :  { %450 = vst.msk [vmem:[%s975_s1] sm:$0xff] %vm449_vm2, %v448_v29  }

// kernel: tile.31
= control target key start
LH: loop header
LB: loop body
LE: loop exit
PB: predicated region body
PF: predicated region fallthrough
CT: control target
= control target key end

     0   :  { %s28_s0 = inlined_call_operand.vmem [shape: f32[8], index: 0, kind: input, shape index: {}]   ;;  %s29_s1 = inlined_call_operand.vmem [shape: f32[16,8], index: 1, kind: output, shape index: {}]  }
   0x1   :  { %v4_v0 = vld [vmem:[%s28_s0] ss:$0 sm:$0xff] }
   0x2   :  { %5 = vst [vmem:[%s29_s1] sm:$0xff] %v4_v0 }
   0x3   :  { %8 = vst [vmem:[%s29_s1 + $0x8] sm:$0xff] %v4_v0 }

// kernel: tile.32
= control target key start
LH: loop header
LB: loop body
LE: loop exit
PB: predicated region body
PF: predicated region fallthrough
CT: control target
= control target key end

     0   :  { %s131_s10 = smov 120   ;;  %s132_s11 = smov 104   ;;  %vm3_vm0 = vcmask 64512   ;;  %vm9_vm1 = vcmask 1048512   ;;  %vm15_vm2 = vcmask 982912   ;;  %vm21_vm3 = vcmask 917312   ;;  %s207_s0 = inlined_call_operand.vmem [shape: f32[16,8], index: 0, kind: input, shape index: {}]   ;;  %s208_s1 = inlined_call_operand.vmem [shape: f32[1,128], index: 1, kind: output, shape index: {}]  }
   0x1   :  { %v101_v0 = vld [vmem:[%s207_s0 + $0xf] sm:$0x1]   ;;  %v103_v1 = vld [vmem:[%s207_s0 + $0xd] sm:$0x1]   ;;  %v105_v2 = vld [vmem:[%s207_s0 + $0xb] sm:$0x1]  }
   0x2   :  { %7 = vrot.lane.b32.xlu0 %v101_v0, %s131_s10  ;;  %19 = vrot.lane.b32.xlu1 %v103_v1, %s132_s11  ;;  %s133_s14 = smov 88   ;;  %v102_v3 = vld [vmem:[%s207_s0 + $0xe] sm:$0x1]   ;;  %v104_v4 = vld [vmem:[%s207_s0 + $0xc] sm:$0x1]   ;;  %s134_s19 = smov 112  }
   0x3   :  { %31 = vrot.lane.b32.xlu2 %v105_v2, %s133_s14  ;;  %s135_s20 = smov 96   ;;  %v106_v5 = vld [vmem:[%s207_s0 + $0xa] sm:$0x1]   ;;  %s136_s23 = smov 80   ;;  %v107_v6 = vld [vmem:[%s207_s0 + $0x9] sm:$0x1]  }
   0x4   :  { %v108_v7 = vld [vmem:[%s207_s0 + $0x8] sm:$0x1]   ;;  %s137_s28 = smov 72   ;;  %s138_s29 = smov 64   ;;  %v109_v8 = vld [vmem:[%s207_s0 + $0x7] sm:$0x1]  }
   0x5   :  { %s139_s3 = smov 56   ;;  %v110_v9 = vld [vmem:[%s207_s0 + $0x6] sm:$0x1]   ;;  %v111_v10 = vld [vmem:[%s207_s0 + $0x5] sm:$0x1]   ;;  %s140_s8 = smov 48  }
   0x6   :  { %s141_s9 = smov 40   ;;  %v112_v11 = vld [vmem:[%s207_s0 + $0x4] sm:$0x1]   ;;  %s142_s12 = smov 32   ;;  %v113_v12 = vld [vmem:[%s207_s0 + $0x3] sm:$0x1]  }
   0x7   :  { %v114_v13 = vld [vmem:[%s207_s0 + $0x2] sm:$0x1]   ;;  %s143_s17 = smov 24   ;;  %s144_s18 = smov 16   ;;  %v115_v14 = vld [vmem:[%s207_s0 + $0x1] sm:$0x1]  }
   0x8   :  { %s145_s21 = smov 8   ;;  %v2_v15 = vld [vmem:[%s207_s0] sm:$0x1]   ;;  %vm27_vm4 = vcmask 851712   ;;  %vm33_vm5 = vcmask 786112   ;;  %vm39_vm6 = vcmask 720512  }
   0x9   :  { %4 = vst.msk [vmem:[#allocation0] sm:$0x1] %vm3_vm0, %v2_v15   ;;  %vm45_vm7 = vcmask 654912   ;;  %vm51_vm8 = vcmask 589312   ;;  %vm57_vm9 = vcmask 523712   ;;  %vm63_vm10 = vcmask 458112  }
   0xa   :  { %13 = vrot.lane.b32.xlu0 %v102_v3, %s134_s19  ;;  %25 = vrot.lane.b32.xlu1 %v104_v4, %s135_s20  ;;  %vm69_vm11 = vcmask 392512   ;;  %vm75_vm12 = vcmask 326912   ;;  %vm81_vm13 = vcmask 261312   ;;  %vm87_vm14 = vcmask 195712  }
   0xb   :  { %37 = vrot.lane.b32.xlu2 %v106_v5, %s136_s23  ;;  %vm93_vm15 = vcmask 130112  }
  0x12   :  { %43 = vrot.lane.b32.xlu0 %v107_v6, %s137_s28  ;;  %49 = vrot.lane.b32.xlu1 %v108_v7, %s138_s29 }
  0x13   :  { %55 = vrot.lane.b32.xlu2 %v109_v8, %s139_s3 }
  0x1a   :  { %61 = vrot.lane.b32.xlu0 %v110_v9, %s140_s8  ;;  %67 = vrot.lane.b32.xlu1 %v111_v10, %s141_s9 }
  0x1b   :  { %73 = vrot.lane.b32.xlu2 %v112_v11, %s142_s12 }
  0x22   :  { %79 = vrot.lane.b32.xlu0 %v113_v12, %s143_s17  ;;  %85 = vrot.lane.b32.xlu1 %v114_v13, %s144_s18 }
  0x23   :  { %91 = vrot.lane.b32.xlu2 %v115_v14, %s145_s21 }
  0x5d   :  { %v32_v16 = vpop.permute.xlu2 %31  }
  0x65   :  { %v38_v17 = vpop.permute.xlu2 %37  }
  0x6d   :  { %v56_v18 = vpop.permute.xlu2 %55  }
  0x74   :  { %v8_v19 = vpop.permute.xlu0 %7   ;;  %v20_v20 = vpop.permute.xlu1 %19  }
  0x75   :  { %10 = vst.msk [vmem:[#allocation0] sm:$0x1] %vm9_vm1, %v8_v19   ;;  %v74_v21 = vpop.permute.xlu2 %73  }
  0x7c   :  { %v14_v22 = vpop.permute.xlu0 %13   ;;  %v26_v23 = vpop.permute.xlu1 %25  }
  0x7d   :  { %16 = vst.msk [vmem:[#allocation0] sm:$0x1] %vm15_vm2, %v14_v22   ;;  %v92_v24 = vpop.permute.xlu2 %91  }
  0x7e   :  { %22 = vst.msk [vmem:[#allocation0] sm:$0x1] %vm21_vm3, %v20_v20  }
  0x7f   :  { %28 = vst.msk [vmem:[#allocation0] sm:$0x1] %vm27_vm4, %v26_v23  }
  0x80   :  { %34 = vst.msk [vmem:[#allocation0] sm:$0x1] %vm33_vm5, %v32_v16  }
  0x81   :  { %40 = vst.msk [vmem:[#allocation0] sm:$0x1] %vm39_vm6, %v38_v17  }
  0x84   :  { %v44_v25 = vpop.permute.xlu0 %43   ;;  %v50_v26 = vpop.permute.xlu1 %49  }
  0x85   :  { %46 = vst.msk [vmem:[#allocation0] sm:$0x1] %vm45_vm7, %v44_v25  }
  0x86   :  { %52 = vst.msk [vmem:[#allocation0] sm:$0x1] %vm51_vm8, %v50_v26  }
  0x87   :  { %58 = vst.msk [vmem:[#allocation0] sm:$0x1] %vm57_vm9, %v56_v18  }
  0x8c   :  { %v62_v27 = vpop.permute.xlu0 %61   ;;  %v68_v28 = vpop.permute.xlu1 %67  }
  0x8d   :  { %64 = vst.msk [vmem:[#allocation0] sm:$0x1] %vm63_vm10, %v62_v27  }
  0x8e   :  { %70 = vst.msk [vmem:[#allocation0] sm:$0x1] %vm69_vm11, %v68_v28  }
  0x8f   :  { %76 = vst.msk [vmem:[#allocation0] sm:$0x1] %vm75_vm12, %v74_v21  }
  0x94   :  { %v80_v29 = vpop.permute.xlu0 %79   ;;  %v86_v30 = vpop.permute.xlu1 %85  }
  0x95   :  { %82 = vst.msk [vmem:[#allocation0] sm:$0x1] %vm81_vm13, %v80_v29  }
  0x96   :  { %88 = vst.msk [vmem:[#allocation0] sm:$0x1] %vm87_vm14, %v86_v30  }
  0x97   :  { %94 = vst.msk [vmem:[#allocation0] sm:$0x1] %vm93_vm15, %v92_v24  }
  0x9e   :  { %v97_v31 = vld [vmem:[#allocation0] sm:$0x1] }
  0x9f   :  { %100 = vst [vmem:[%s208_s1] sm:$0x1] %v97_v31 }

// kernel: mobilenet_block.4
= control target key start
LH: loop header
LB: loop body
LE: loop exit
PB: predicated region body
PF: predicated region fallthrough
CT: control target
= control target key end

     0   :  { %v306_v2 = vmov 0.0   ;;  %vm121_vm0 = vcmask 261120   ;;  %s423_s0 = inlined_call_operand.vmem [shape: f32[32,128], index: 0, kind: input, shape index: {}]   ;;  %s424_s1 = inlined_call_operand.vmem [shape: f32[1,128], index: 1, kind: input, shape index: {}]   ;;  %s425_s2 = inlined_call_operand.vmem [shape: f32[1,128], index: 2, kind: input, shape index: {}]   ;;  %s426_s3 = inlined_call_operand.vmem [shape: f32[1,128], index: 3, kind: output, shape index: {0}]   ;;  %s427_s4 = inlined_call_operand.vmem [shape: f32[128,128], index: 4, kind: output, shape index: {1}]  }
   0x1   :  { %v37_v0 = vld [vmem:[%s423_s0] sm:$0xff]  ;;  %20 = vst [vmem:[%s426_s3] sm:$0x1] %v306_v2  ;;  %v38_v4 = vld [vmem:[%s423_s0 + $0x8] sm:$0xff]  ;;  %v39_v7 = vld [vmem:[%s423_s0 + $0x10] sm:$0xff] }
   0x2   :  { %v304_v1 = vld [vmem:[%s424_s1] ss:$0 sm:$0xff]  ;;  %v40_v8 = vld [vmem:[%s423_s0 + $0x18] sm:$0xff] }
   0x3   :  { %v305_v3 = vld [vmem:[%s425_s2] ss:$0 sm:$0xff]  ;;  %v45_v5 = vmul.f32 %v304_v1, %v37_v0  ;;  %v46_v6 = vmul.f32 %v304_v1, %v38_v4  ;;  %v47_v9 = vmul.f32 %v304_v1, %v39_v7  ;;  %v48_v10 = vmul.f32 %v304_v1, %v40_v8 }
   0x5   :  { %v53_v11 = vadd.f32 %v305_v3, %v45_v5  ;;  %v54_v12 = vadd.f32 %v305_v3, %v46_v6  ;;  %v55_v13 = vadd.f32 %v305_v3, %v47_v9  ;;  %v56_v14 = vadd.f32 %v305_v3, %v48_v10 }
   0x7   :  { %v57_v15 = vmax.f32 %v53_v11, 0.0  ;;  %v58_v16 = vmax.f32 %v54_v12, 0.0  ;;  %v60_v17 = vmax.f32 %v56_v14, 0.0  ;;  %v59_v19 = vmax.f32 %v55_v13, 0.0 }
   0x8   :  { %v61_v27 = vld [vmem:[%s426_s3] sm:$0x1] }
   0x9   :  { %89 = vxpose.xlu0.b32.start [1/4] (short) %v57_v15, 128  ;;  %v62_v18 = vadd.f32 %v58_v16, %v57_v15  ;;  %182 = vmatpush.msra.mxu0 %v60_v17 }
   0xa   :  { %291 = vmatpush.msra.mxu1 %v60_v17  ;;  %292 = vmatpush.msra.mxu2 %v60_v17 }
   0xb   :  { %v63_v20 = vadd.f32 %v62_v18, %v59_v19  ;;  %293 = vmatpush.msra.mxu3 %v60_v17  ;;  %183 = vmatpush.msra.mxu0 %v59_v19 }
   0xc   :  { %294 = vmatpush.msra.mxu1 %v59_v19  ;;  %295 = vmatpush.msra.mxu2 %v59_v19 }
   0xd   :  { %v64_v21 = vadd.f32 %v63_v20, %v60_v17  ;;  %296 = vmatpush.msra.mxu3 %v59_v19  ;;  %184 = vmatpush.msra.mxu0 %v58_v16 }
   0xe   :  { %297 = vmatpush.msra.mxu1 %v58_v16  ;;  %298 = vmatpush.msra.mxu2 %v58_v16 }
   0xf   :  { %v65_v22 = vrot.slane %v64_v21, 4  ;;  %299 = vmatpush.msra.mxu3 %v58_v16  ;;  %185 = vmatpush.msra.mxu0 %v57_v15 }
  0x10   :  { %300 = vmatpush.msra.mxu1 %v57_v15  ;;  %301 = vmatpush.msra.mxu2 %v57_v15 }
  0x11   :  { %90 = vxpose.xlu0.b32.cont [2/4] (short) %v58_v16, 128  ;;  %v66_v23 = vadd.f32 %v65_v22, %v64_v21  ;;  %302 = vmatpush.msra.mxu3 %v57_v15 }
  0x13   :  { %v67_v24 = vrot.slane %v66_v23, 2 }
  0x15   :  { %v68_v25 = vadd.f32 %v67_v24, %v66_v23 }
  0x17   :  { %v69_v26 = vrot.slane %v68_v25, 1 }
  0x19   :  { %91 = vxpose.xlu0.b32.cont [3/4] (short) %v59_v19, 128  ;;  %v70_v28 = vadd.f32 %v69_v26, %v68_v25 }
  0x1b   :  { %v71_v29 = vadd.f32 %v70_v28, %v61_v27 }
  0x1d   :  { %72 = vst [vmem:[%s426_s3] sm:$0x1] %v71_v29 }
  0x21   :  { %92 = vxpose.xlu0.b32.end [4/4] (short) %v60_v17, 128 }
  0xad   :  { %v105_v30 = vpop.trf.xlu0 }
  0xae   :  { %275 = vmatmul.msk.f32.vlgmr.msra.gmra.mxu0 %vm121_vm0, %v105_v30 }
  0xb5   :  { %v106_v31 = vpop.trf.xlu0 }
  0xb6   :  { %276 = vmatmul.msk.f32.gmra.mxu0 %vm121_vm0, %v106_v31 }
  0xbd   :  { %v107_v32 = vpop.trf.xlu0 }
  0xbe   :  { %277 = vmatmul.msk.f32.gmra.mxu0 %vm121_vm0, %v107_v32 }
  0xc5   :  { %v108_v33 = vpop.trf.xlu0 }
  0xc6   :  { %278 = vmatmul.msk.f32.gmra.mxu0 %vm121_vm0, %v108_v33 }
  0xcd   :  { %v109_v34 = vpop.trf.xlu0 }
  0xce   :  { %279 = vmatmul.msk.f32.vlgmr.msra.gmra.mxu1 %vm121_vm0, %v109_v34 }
  0xd5   :  { %v110_v35 = vpop.trf.xlu0 }
  0xd6   :  { %280 = vmatmul.msk.f32.gmra.mxu1 %vm121_vm0, %v110_v35 }
  0xdd   :  { %v111_v36 = vpop.trf.xlu0 }
  0xde   :  { %281 = vmatmul.msk.f32.gmra.mxu1 %vm121_vm0, %v111_v36 }
  0xe5   :  { %v112_v37 = vpop.trf.xlu0 }
  0xe6   :  { %282 = vmatmul.msk.f32.gmra.mxu1 %vm121_vm0, %v112_v37 }
  0xed   :  { %v113_v38 = vpop.trf.xlu0 }
  0xee   :  { %283 = vmatmul.msk.f32.vlgmr.msra.gmra.mxu2 %vm121_vm0, %v113_v38 }
  0xf5   :  { %v114_v39 = vpop.trf.xlu0 }
  0xf6   :  { %284 = vmatmul.msk.f32.gmra.mxu2 %vm121_vm0, %v114_v39 }
  0xfd   :  { %v115_v40 = vpop.trf.xlu0 }
  0xfe   :  { %285 = vmatmul.msk.f32.gmra.mxu2 %vm121_vm0, %v115_v40 }
 0x105   :  { %v116_v41 = vpop.trf.xlu0 }
 0x106   :  { %286 = vmatmul.msk.f32.gmra.mxu2 %vm121_vm0, %v116_v41 }
 0x10d   :  { %v117_v42 = vpop.trf.xlu0 }
 0x10e   :  { %287 = vmatmul.msk.f32.vlgmr.msra.gmra.mxu3 %vm121_vm0, %v117_v42 }
 0x115   :  { %v118_v43 = vpop.trf.xlu0 }
 0x116   :  { %288 = vmatmul.msk.f32.gmra.mxu3 %vm121_vm0, %v118_v43 }
 0x11d   :  { %v119_v44 = vpop.trf.xlu0 }
 0x11e   :  { %289 = vmatmul.msk.f32.gmra.mxu3 %vm121_vm0, %v119_v44 }
 0x125   :  { %v120_v45 = vpop.trf.xlu0 }
 0x126   :  { %290 = vmatmul.msk.f32.gmra.mxu3 %vm121_vm0, %v120_v45 }
 0x12b   :  { %v187_v46 = vpop.f32.mrf.mxu0 }
 0x12c   :  { %251 = vst [vmem:[%s427_s4] sm:$0xff] %v187_v46 }
 0x133   :  { %v190_v47 = vpop.f32.mrf.mxu0 }
 0x134   :  { %252 = vst [vmem:[%s427_s4 + $0x8] sm:$0xff] %v190_v47 }
 0x13b   :  { %v193_v48 = vpop.f32.mrf.mxu0 }
 0x13c   :  { %253 = vst [vmem:[%s427_s4 + $0x10] sm:$0xff] %v193_v48 }
 0x143   :  { %v196_v49 = vpop.f32.mrf.mxu0 }
 0x144   :  { %254 = vst [vmem:[%s427_s4 + $0x18] sm:$0xff] %v196_v49 }
 0x14b   :  { %v199_v50 = vpop.f32.mrf.mxu1 }
 0x14c   :  { %255 = vst [vmem:[%s427_s4 + $0x20] sm:$0xff] %v199_v50 }
 0x153   :  { %v202_v51 = vpop.f32.mrf.mxu1 }
 0x154   :  { %256 = vst [vmem:[%s427_s4 + $0x28] sm:$0xff] %v202_v51 }
 0x15b   :  { %v205_v52 = vpop.f32.mrf.mxu1 }
 0x15c   :  { %257 = vst [vmem:[%s427_s4 + $0x30] sm:$0xff] %v205_v52 }
 0x163   :  { %v208_v53 = vpop.f32.mrf.mxu1 }
 0x164   :  { %258 = vst [vmem:[%s427_s4 + $0x38] sm:$0xff] %v208_v53 }
 0x171   :  { %v211_v54 = vpop.f32.mrf.mxu2 }
 0x172   :  { %259 = vst [vmem:[%s427_s4 + $0x40] sm:$0xff] %v211_v54 }
 0x179   :  { %v214_v55 = vpop.f32.mrf.mxu2 }
 0x17a   :  { %260 = vst [vmem:[%s427_s4 + $0x48] sm:$0xff] %v214_v55 }
 0x181   :  { %v217_v56 = vpop.f32.mrf.mxu2 }
 0x182   :  { %261 = vst [vmem:[%s427_s4 + $0x50] sm:$0xff] %v217_v56 }
 0x189   :  { %v220_v57 = vpop.f32.mrf.mxu2 }
 0x18a   :  { %262 = vst [vmem:[%s427_s4 + $0x58] sm:$0xff] %v220_v57 }
 0x191   :  { %v223_v58 = vpop.f32.mrf.mxu3 }
 0x192   :  { %263 = vst [vmem:[%s427_s4 + $0x60] sm:$0xff] %v223_v58 }
 0x199   :  { %v226_v59 = vpop.f32.mrf.mxu3 }
 0x19a   :  { %264 = vst [vmem:[%s427_s4 + $0x68] sm:$0xff] %v226_v59 }
 0x1a1   :  { %v229_v60 = vpop.f32.mrf.mxu3 }
 0x1a2   :  { %265 = vst [vmem:[%s427_s4 + $0x70] sm:$0xff] %v229_v60 }
 0x1a9   :  { %v232_v61 = vpop.f32.mrf.mxu3 }
 0x1aa   :  { %266 = vst [vmem:[%s427_s4 + $0x78] sm:$0xff] %v232_v61 }

// kernel: mobilenet_block.3
= control target key start
LH: loop header
LB: loop body
LE: loop exit
PB: predicated region body
PF: predicated region fallthrough
CT: control target
= control target key end

     0   :  { %s634_s12 = smov 0   ;;  %s800_s0 = inlined_call_operand.vmem [shape: f32[2,18,144], index: 0, kind: input, shape index: {}]   ;;  %s801_s1 = inlined_call_operand.vmem [shape: f32[9,128], index: 1, kind: input, shape index: {}]   ;;  %s802_s2 = inlined_call_operand.vmem [shape: f32[2,16,128], index: 2, kind: output, shape index: {0}]   ;;  %s803_s3 = inlined_call_operand.vmem [shape: f32[2,2,128], index: 3, kind: output, shape index: {1}]  }
   0x1 LB: > { %s568_s13 = sadd.s32 4294967295, %s608_s12   ;;  %p572_p0 = scmp.ge.s32.totalorder %s608_s12, 1  ;;  %s608_s12 = sphi %s634_s12, %s14_s12  }
   0x2   : > { %p140_p1 = scmp.lt.s32.totalorder %s608_s12, 3 }
   0x4   : > { %p141_p2 = pnand %p572_p0, %p140_p1 }
   0x5   : > { %s610_s16 = smov (!%p141_p2), 8   ;;  %s611_s27 = smov (!%p141_p2), 16  }
   0x6   : > { %144 = sbr.rel (%p141_p2) target bundleno = 321 (0x141), region = 28  ;;  %p168_p3 = scmp.lt.s32.totalorder (!%p141_p2), %s568_s13, 1 }
   0x7   : > { %s612_s5 = smov (!%p141_p2), 120   ;;  %s613_s6 = smov (!%p141_p2), 112  }
   0xb   : > { %v593_v0 = vld [vmem:[%s801_s1 + $0x1] ss:$0 sm:$0xff]  ;;  %v595_v1 = vld [vmem:[%s801_s1 + $0x4] ss:$0 sm:$0xff]  ;;  %v597_v2 = vld [vmem:[%s801_s1 + $0x7] ss:$0 sm:$0xff] }
   0xc   : > { %195 = vrot.lane.b32.xlu0 %v593_v0, %s610_s16  ;;  %275 = vrot.lane.b32.xlu1 %v595_v1, %s610_s16  ;;  %v594_v3 = vld [vmem:[%s801_s1 + $0x2] ss:$0 sm:$0xff]  ;;  %v596_v4 = vld [vmem:[%s801_s1 + $0x5] ss:$0 sm:$0xff]  ;;  %s805_s13 = smov (!%p168_p3, %s568_s13), 1  ;;  %vm260_vm0 = vcmask 1046528  }
   0xd   : > { %381 = vrot.lane.b32.xlu2 %v597_v2, %s610_s16  ;;  %v598_v5 = vld [vmem:[%s801_s1 + $0x8] ss:$0 sm:$0xff]  ;;  %s580_s28 = smul.u32 48, %s805_s13  ;;  %vm366_vm1 = vcmask 1045504   ;;  %vm214_vm2 = vcmask 982016   ;;  %vm243_vm3 = vcmask 916480  }
   0xe   : > { %s579_s15 = sshll.u32 %s805_s13, 4  ;;  %s576_s19 = sshll.u32 %s805_s13, 1 }
   0xf   : > { %s666_s4 = scalar_lea.vmem %s800_s0, %s580_s28  ;;  %s177_s18 = scalar_lea.vmem %s802_s2, %s579_s15 }
  0x10   : > { %v190_v6 = vld [vmem:[%s666_s4 + $0x8] sm:$0xff]  ;;  %v670_v7 = vld [vmem:[%s666_s4 + $0x10] sm:$0xff]  ;;  %v673_v8 = vld [vmem:[%s666_s4] sm:$0xff]  ;;  %s181_s22 = scalar_lea.vmem %s803_s3, %s576_s19 }
  0x11   : > { %v681_v14 = vld [vmem:[%s666_s4] sm:$0xfe]  ;;  %v684_v15 = vld [vmem:[%s666_s4 + $0x18] sm:$0xff]  ;;  %v271_v24 = vld [vmem:[%s666_s4 + $0x28] sm:$0x1] }
  0x12   : > { %v695_v25 = vld [vmem:[%s666_s4 + $0x20] sm:$0x1]  ;;  %v270_v26 = vld [vmem:[%s666_s4 + $0x8] sm:$0xfe]  ;;  %v718_v54 = vld [vmem:[%s666_s4] sm:$0xfc] }
  0x13   : > { %v376_v52 = vld [vmem:[%s666_s4 + $0x8] sm:$0xfc] }
  0x14   : > { %224 = vrot.lane.b32.xlu0 %v594_v3, %s611_s27  ;;  %317 = vrot.lane.b32.xlu1 %v596_v4, %s611_s27 }
  0x15   : > { %423 = vrot.lane.b32.xlu2 %v598_v5, %s611_s27  ;;  %v377_v5 = vld [vmem:[%s666_s4 + $0x28] sm:$0x3] }
  0x67   : > { %v382_v47 = vpop.permute.xlu2 %381 }
  0x68   : > { %v385_v55 = vmul.f32 %v382_v47, %v376_v52  ;;  %v387_v56 = vmul.f32 %v382_v47, %v684_v15  ;;  %v384_v59 = vmul.f32 %v382_v47, %v718_v54  ;;  %v386_v60 = vmul.f32 %v382_v47, %v670_v7 }
  0x6a   : > { %v399_v63 = vrot.slane %v385_v55, 2  ;;  %v400_v0 = vrot.slane %v387_v56, 2  ;;  %v396_v1 = vrot.slane %v384_v59, 2  ;;  %v397_v2 = vrot.slane %v386_v60, 2 }
  0x6f   : > { %v424_v3 = vpop.permute.xlu2 %423 }
  0x7e   : > { %v196_v9 = vpop.permute.xlu0 %195  ;;  %v276_v13 = vpop.permute.xlu1 %275 }
  0x7f   : > { %v199_v10 = vmul.f32 %v196_v9, %v190_v6  ;;  %v200_v11 = vmul.f32 %v196_v9, %v670_v7  ;;  %v198_v12 = vmul.f32 %v196_v9, %v673_v8  ;;  %v278_v17 = vmul.f32 %v276_v13, %v681_v14 }
  0x80   : > { %v280_v18 = vmul.f32 %v276_v13, %v670_v7  ;;  %v201_v21 = vmul.f32 %v196_v9, %v684_v15  ;;  %v281_v27 = vmul.f32 %v276_v13, %v684_v15  ;;  %v283_v28 = vmul.f32 %v276_v13, %v271_v24 }
  0x81   : > { %208 = vrot.lane.b32.xlu1 %v199_v10, %s612_s5  ;;  %210 = vrot.lane.b32.xlu2 %v200_v11, %s612_s5  ;;  %v290_v22 = vrot.slane %v278_v17, 1  ;;  %v282_v29 = vmul.f32 %v276_v13, %v695_v25  ;;  %v279_v32 = vmul.f32 %v276_v13, %v270_v26  ;;  %v398_v9 = vsel %vm366_vm1, %v396_v1, %v397_v2 }
  0x82   : > { %206 = vrot.lane.b32.xlu0 %v198_v12, %s612_s5  ;;  %v291_v23 = vrot.slane %v280_v18, 1  ;;  %v294_v34 = vrot.slane %v281_v27, 1  ;;  %v298_v35 = vrot.slane %v283_v28, 1  ;;  %v426_v10 = vmul.f32 %v424_v3, %v718_v54  ;;  %v735_v12 = vld [vmem:[%s666_s4 + $0x20] sm:$0x3] }
  0x83   : > { %v296_v36 = vrot.slane %v282_v29, 1  ;;  %v293_v37 = vrot.slane %v279_v32, 1  ;;  %v428_v11 = vmul.f32 %v424_v3, %v670_v7  ;;  %v389_v13 = vmul.f32 %v382_v47, %v377_v5 }
  0x84   : > { %v292_v30 = vsel %vm260_vm0, %v290_v22, %v291_v23  ;;  %v299_v39 = vsel %vm260_vm0, %v294_v34, %v298_v35  ;;  %v388_v17 = vmul.f32 %v382_v47, %v735_v12  ;;  %v438_v18 = vrot.slane %v426_v10, 2 }
  0x85   : > { %v297_v40 = vsel %vm260_vm0, %v291_v23, %v296_v36  ;;  %v295_v45 = vsel %vm260_vm0, %v293_v37, %v294_v34  ;;  %v429_v23 = vmul.f32 %v424_v3, %v684_v15  ;;  %v427_v27 = vmul.f32 %v424_v3, %v376_v52 }
  0x86   : > { %v225_v16 = vpop.permute.xlu0 %224  ;;  %v318_v38 = vpop.permute.xlu1 %317 }
  0x87   : > { %v228_v19 = vmul.f32 %v225_v16, %v190_v6  ;;  %v227_v20 = vmul.f32 %v225_v16, %v673_v8  ;;  %v230_v31 = vmul.f32 %v225_v16, %v684_v15  ;;  %v229_v33 = vmul.f32 %v225_v16, %v670_v7 }
  0x88   : > { %v322_v41 = vmul.f32 %v318_v38, %v670_v7  ;;  %v324_v42 = vmul.f32 %v318_v38, %v695_v25  ;;  %v321_v43 = vmul.f32 %v318_v38, %v270_v26  ;;  %v323_v44 = vmul.f32 %v318_v38, %v684_v15 }
  0x89   : > { %237 = vrot.lane.b32.xlu2 %v228_v19, %s613_s6  ;;  %235 = vrot.lane.b32.xlu1 %v227_v20, %s613_s6  ;;  %v320_v46 = vmul.f32 %v318_v38, %v681_v14  ;;  %v325_v62 = vmul.f32 %v318_v38, %v271_v24  ;;  %v401_v6 = vsel %vm366_vm1, %v399_v63, %v400_v0  ;;  %v439_v19 = vrot.slane %v428_v11, 2 }
  0x8a   : > { %212 = vrot.lane.b32.xlu0 %v201_v21, %s612_s5  ;;  %v333_v48 = vrot.slane %v322_v41, 1  ;;  %v338_v49 = vrot.slane %v324_v42, 1  ;;  %v335_v50 = vrot.slane %v321_v43, 1  ;;  %v336_v51 = vrot.slane %v323_v44, 1 }
  0x8b   : > { %v332_v53 = vrot.slane %v320_v46, 1  ;;  %v340_v4 = vrot.slane %v325_v62, 1  ;;  %v404_v20 = vrot.slane %v389_v13, 2  ;;  %v402_v21 = vrot.slane %v388_v17, 2 }
  0x8c   : > { %v339_v57 = vsel %vm260_vm0, %v333_v48, %v338_v49  ;;  %v337_v58 = vsel %vm260_vm0, %v335_v50, %v336_v51  ;;  %v440_v22 = vsel %vm366_vm1, %v438_v18, %v439_v19  ;;  %v431_v24 = vmul.f32 %v424_v3, %v377_v5  ;;  %v600_v49 = vld [vmem:[%s801_s1 + $0x3] ss:$0 sm:$0xff] }
  0x8d   : > { %v334_v61 = vsel %vm260_vm0, %v332_v53, %v333_v48  ;;  %v341_v16 = vsel %vm260_vm0, %v336_v51, %v340_v4  ;;  %v430_v26 = vmul.f32 %v424_v3, %v735_v12  ;;  %v405_v28 = vsel %vm366_vm1, %v400_v0, %v404_v20  ;;  %v599_v51 = vld [vmem:[%s801_s1] ss:$0 sm:$0xff]  ;;  %v601_v3 = vld [vmem:[%s801_s1 + $0x6] ss:$0 sm:$0xff] }
  0x8e   : > { %v403_v29 = vsel %vm366_vm1, %v397_v2, %v402_v21  ;;  %v256_v53 = vmul.f32 %v600_v49, %v695_v25  ;;  %v187_v55 = vmul.f32 %v599_v51, %v670_v7  ;;  %v186_v59 = vmul.f32 %v599_v51, %v673_v8 }
  0x8f   : > { %v444_v32 = vrot.slane %v430_v26, 2  ;;  %v362_v10 = vmul.f32 %v601_v3, %v735_v12  ;;  %v360_v13 = vmul.f32 %v601_v3, %v718_v54 }
  0x90   : > { %v264_v63 = vrot.slane %v256_v53, 1 }
  0x91   : > { %300 = vrot.lane.b32.xlu2 %v292_v30, %s612_s5  ;;  %241 = vrot.lane.b32.xlu1 %v230_v31, %s613_s6  ;;  %v442_v30 = vrot.slane %v429_v23, 2  ;;  %v446_v31 = vrot.slane %v431_v24, 2  ;;  %v445_v34 = vsel %vm366_vm1, %v439_v19, %v444_v32  ;;  %v370_v23 = vrot.slane %v362_v10, 2 }
  0x92   : > { %239 = vrot.lane.b32.xlu0 %v229_v33, %s613_s6  ;;  %v441_v33 = vrot.slane %v427_v27, 2  ;;  %v367_v26 = vrot.slane %v360_v13, 2 }
  0x93   : > { %v447_v15 = vsel %vm366_vm1, %v442_v30, %v446_v31 }
  0x94   : > { %v443_v35 = vsel %vm366_vm1, %v441_v33, %v442_v30 }
  0x99   : > { %306 = vrot.lane.b32.xlu2 %v299_v39, %s612_s5  ;;  %304 = vrot.lane.b32.xlu1 %v297_v40, %s612_s5 }
  0x9a   : > { %302 = vrot.lane.b32.xlu0 %v295_v45, %s612_s5 }
  0xa1   : > { %346 = vrot.lane.b32.xlu2 %v339_v57, %s613_s6  ;;  %344 = vrot.lane.b32.xlu1 %v337_v58, %s613_s6  ;;  %v255_v57 = vmul.f32 %v600_v49, %v670_v7  ;;  %v254_v58 = vmul.f32 %v600_v49, %v681_v14 }
  0xa2   : > { %342 = vrot.lane.b32.xlu0 %v334_v61, %s613_s6 }
  0xa3   : > { %v262_v1 = vrot.slane %v255_v57, 1  ;;  %v261_v2 = vrot.slane %v254_v58, 1 }
  0xa5   : > { %v263_v11 = vsel %vm260_vm0, %v261_v2, %v262_v1 }
  0xa9   : > { %408 = vrot.lane.b32.xlu2 %v401_v6, %s612_s5  ;;  %406 = vrot.lane.b32.xlu1 %v398_v9, %s612_s5  ;;  %v265_v9 = vsel %vm260_vm0, %v262_v1, %v264_v63 }
  0xaa   : > { %348 = vrot.lane.b32.xlu0 %v341_v16, %s613_s6  ;;  %v361_v16 = vmul.f32 %v601_v3, %v670_v7 }
  0xac   : > { %v368_v27 = vrot.slane %v361_v16, 2 }
  0xae   : > { %v371_v31 = vsel %vm366_vm1, %v368_v27, %v370_v23  ;;  %v369_v32 = vsel %vm366_vm1, %v367_v26, %v368_v27 }
  0xb1   : > { %448 = vrot.lane.b32.xlu2 %v440_v22, %s613_s6  ;;  %412 = vrot.lane.b32.xlu1 %v405_v28, %s612_s5 }
  0xb2   : > { %410 = vrot.lane.b32.xlu0 %v403_v29, %s612_s5 }
  0xb9   : > { %454 = vrot.lane.b32.xlu2 %v447_v15, %s613_s6  ;;  %452 = vrot.lane.b32.xlu1 %v445_v34, %s613_s6 }
  0xba   : > { %450 = vrot.lane.b32.xlu0 %v443_v35, %s613_s6 }
  0xdb   : > { %v211_v36 = vpop.permute.xlu2 %210 }
  0xe3   : > { %v238_v37 = vpop.permute.xlu2 %237 }
  0xeb   : > { %v301_v40 = vpop.permute.xlu2 %300 }
  0xf3   : > { %v209_v38 = vpop.permute.xlu1 %208  ;;  %v307_v43 = vpop.permute.xlu2 %306 }
  0xf4   : > { %v207_v39 = vpop.permute.xlu0 %206 }
  0xf5   : > { %v215_v61 = vsel %vm214_vm2, %v207_v39, %v209_v38 }
  0xf6   : > { %v219_v4 = vadd.f32 %v215_v61, %v186_v59 }
  0xfb   : > { %v236_v41 = vpop.permute.xlu1 %235  ;;  %v347_v48 = vpop.permute.xlu2 %346 }
  0xfc   : > { %v213_v42 = vpop.permute.xlu0 %212  ;;  %v244_v0 = vsel %vm243_vm3, %v236_v41, %v238_v37 }
  0xfd   : > { %v216_v60 = vsel %vm214_vm2, %v211_v36, %v213_v42  ;;  %v248_v6 = vadd.f32 %v244_v0, %v219_v4 }
  0xfe   : > { %v220_v25 = vadd.f32 %v216_v60, %v187_v55 }
  0xff   : > { %v268_v21 = vadd.f32 %v263_v11, %v248_v6 }
 0x103   : > { %v242_v44 = vpop.permute.xlu1 %241  ;;  %v409_v56 = vpop.permute.xlu2 %408 }
 0x104   : > { %v240_v45 = vpop.permute.xlu0 %239 }
 0x105   : > { %v245_v62 = vsel %vm243_vm3, %v240_v45, %v242_v44 }
 0x106   : > { %v249_v5 = vadd.f32 %v245_v62, %v220_v25 }
 0x108   : > { %v269_v19 = vadd.f32 %v265_v9, %v249_v5 }
 0x10b   : > { %v305_v46 = vpop.permute.xlu1 %304  ;;  %v449_v18 = vpop.permute.xlu2 %448 }
 0x10c   : > { %v303_v47 = vpop.permute.xlu0 %302  ;;  %v309_v17 = vsel %vm214_vm2, %v305_v46, %v307_v43 }
 0x10d   : > { %v308_v20 = vsel %vm214_vm2, %v301_v40, %v303_v47  ;;  %v313_v24 = vadd.f32 %v309_v17, %v269_v19 }
 0x10e   : > { %v312_v54 = vadd.f32 %v308_v20, %v268_v21 }
 0x113   : > { %v345_v50 = vpop.permute.xlu1 %344  ;;  %v455_v36 = vpop.permute.xlu2 %454 }
 0x114   : > { %v343_v52 = vpop.permute.xlu0 %342 }
 0x115   : > { %v350_v12 = vsel %vm243_vm3, %v343_v52, %v345_v50 }
 0x116   : > { %v354_v30 = vadd.f32 %v350_v12, %v312_v54 }
 0x118   : > { %v374_v35 = vadd.f32 %v369_v32, %v354_v30 }
 0x11b   : > { %v407_v14 = vpop.permute.xlu1 %406 }
 0x11c   : > { %v349_v8 = vpop.permute.xlu0 %348  ;;  %v414_v15 = vsel %vm214_vm2, %v407_v14, %v409_v56 }
 0x11d   : > { %v351_v22 = vsel %vm243_vm3, %v347_v48, %v349_v8  ;;  %v418_v39 = vadd.f32 %v414_v15, %v374_v35 }
 0x11e   : > { %v355_v7 = vadd.f32 %v351_v22, %v313_v24 }
 0x120   : > { %v375_v34 = vadd.f32 %v371_v31, %v355_v7 }
 0x123   : > { %v413_v28 = vpop.permute.xlu1 %412 }
 0x124   : > { %v411_v29 = vpop.permute.xlu0 %410 }
 0x125   : > { %v415_v33 = vsel %vm214_vm2, %v411_v29, %v413_v28 }
 0x126   : > { %v419_v37 = vadd.f32 %v415_v33, %v375_v34 }
 0x12b   : > { %v453_v38 = vpop.permute.xlu1 %452 }
 0x12c   : > { %v457_v40 = vsel %vm243_vm3, %v453_v38, %v455_v36  ;;  %v451_v41 = vpop.permute.xlu0 %450 }
 0x12d   : > { %v461_v42 = vadd.f32 %v457_v40, %v419_v37  ;;  %v456_v43 = vsel %vm243_vm3, %v449_v18, %v451_v41 }
 0x12e   : > { %v460_v44 = vadd.f32 %v456_v43, %v418_v39 }
 0x12f   : > { %463 = vst [vmem:[%s177_s18 + $0x8] sm:$0xff] %v461_v42  ;;  %v473_v45 = vmul.f32 %v461_v42, %v461_v42 }
 0x130   : > { %462 = vst [vmem:[%s177_s18] sm:$0xff] %v460_v44  ;;  %v464_v46 = vadd.f32 %v461_v42, %v460_v44  ;;  %v472_v47 = vmul.f32 %v460_v44, %v460_v44 }
 0x132   : > { %v465_v48 = vrot.slane %v464_v46, 4  ;;  %v474_v49 = vadd.f32 %v473_v45, %v472_v47 }
 0x134   : > { %v466_v50 = vadd.f32 %v465_v48, %v464_v46  ;;  %v475_v51 = vrot.slane %v474_v49, 4 }
 0x136   : > { %v467_v52 = vrot.slane %v466_v50, 2  ;;  %v476_v53 = vadd.f32 %v475_v51, %v474_v49 }
 0x138   : > { %v468_v55 = vadd.f32 %v467_v52, %v466_v50  ;;  %v477_v56 = vrot.slane %v476_v53, 2 }
 0x13a   : > { %v469_v57 = vrot.slane %v468_v55, 1  ;;  %v478_v58 = vadd.f32 %v477_v56, %v476_v53 }
 0x13c   : > { %v470_v59 = vadd.f32 %v469_v57, %v468_v55  ;;  %v479_v60 = vrot.slane %v478_v58, 1 }
 0x13e   : > { %471 = vst [vmem:[%s181_s22] sm:$0x1] %v470_v59  ;;  %v480_v61 = vadd.f32 %v479_v60, %v478_v58 }
 0x140   : > { %481 = vst [vmem:[%s181_s22 + $0x1] sm:$0x1] %v480_v61 }
 0x141 PF: > { %s14_s12 = sadd.s32 1, %s608_s12  }
 0x142   : > { %p11_p4 = scmp.ge.s32.totalorder %s14_s12, 4  }
 0x144   :  { %13 = sbr.rel (!%p11_p4) target bundleno = 1 (0x1), region = 70 }

// kernel: tile.41
= control target key start
LH: loop header
LB: loop body
LE: loop exit
PB: predicated region body
PF: predicated region fallthrough
CT: control target
= control target key end

     0   :  { %s28_s0 = inlined_call_operand.vmem [shape: f32[16], index: 0, kind: input, shape index: {}]   ;;  %s29_s1 = inlined_call_operand.vmem [shape: f32[16,16], index: 1, kind: output, shape index: {}]  }
   0x1   :  { %v4_v0 = vld [vmem:[%s28_s0] ss:$0 sm:$0xff] }
   0x2   :  { %5 = vst [vmem:[%s29_s1] sm:$0xff] %v4_v0 }
   0x3   :  { %8 = vst [vmem:[%s29_s1 + $0x8] sm:$0xff] %v4_v0 }

// kernel: tile.42
= control target key start
LH: loop header
LB: loop body
LE: loop exit
PB: predicated region body
PF: predicated region fallthrough
CT: control target
= control target key end

     0   :  { %s7_s6 = smov 3  ;;  %s21_s9 = smov 3  ;;  %vm4_vm0 = vcmask 130048   ;;  %vm11_vm1 = vcmask 1048448   ;;  %vm18_vm2 = vcmask 917248   ;;  %vm25_vm3 = vcmask 786048   ;;  %s129_s0 = inlined_call_operand.vmem [shape: f32[16,16], index: 0, kind: input, shape index: {}]   ;;  %s130_s1 = inlined_call_operand.vmem [shape: f32[1,256], index: 1, kind: output, shape index: {}]  }
   0x1   :  { %v67_v0 = vld [vmem:[%s129_s0 + $0x7] ss:$8 sm:%s7_s6]   ;;  %s82_s10 = smov 112   ;;  %v69_v1 = vld [vmem:[%s129_s0 + $0x5] ss:$8 sm:%s21_s9]   ;;  %s83_s13 = smov 80  }
   0x2   :  { %9 = vrot.lane.b32.xlu0 %v67_v0, %s82_s10  ;;  %23 = vrot.lane.b32.xlu1 %v69_v1, %s83_s13  ;;  %s14_s14 = smov 3  ;;  %s28_s15 = smov 3  ;;  %vm32_vm4 = vcmask 654848   ;;  %vm39_vm5 = vcmask 523648   ;;  %vm46_vm6 = vcmask 392448   ;;  %vm53_vm7 = vcmask 261248  }
   0x3   :  { %s35_s16 = smov 3  ;;  %v68_v3 = vld [vmem:[%s129_s0 + $0x6] ss:$8 sm:%s14_s14]   ;;  %s84_s21 = smov 48   ;;  %v70_v4 = vld [vmem:[%s129_s0 + $0x4] ss:$8 sm:%s28_s15]  }
   0x4   :  { %v71_v2 = vld [vmem:[%s129_s0 + $0x3] ss:$8 sm:%s35_s16]   ;;  %s42_s24 = smov 3  ;;  %s85_s25 = smov 96  }
   0x5   :  { %37 = vrot.lane.b32.xlu2 %v71_v2, %s84_s21  ;;  %s86_s26 = smov 64   ;;  %s49_s27 = smov 3  ;;  %v72_v5 = vld [vmem:[%s129_s0 + $0x2] ss:$8 sm:%s42_s24]  }
   0x6   :  { %v73_v6 = vld [vmem:[%s129_s0 + $0x1] ss:$8 sm:%s49_s27]   ;;  %s87_s3 = smov 32   ;;  %s88_s4 = smov 16  }
   0x7   :  { %s2_s5 = smov 3 }
   0x8   :  { %v3_v7 = vld [vmem:[%s129_s0] ss:$8 sm:%s2_s5]  }
   0x9   :  { %5 = vst.msk [vmem:[#allocation0] ss:$8 sm:$0x3] %vm4_vm0, %v3_v7  }
   0xa   :  { %16 = vrot.lane.b32.xlu0 %v68_v3, %s85_s25  ;;  %30 = vrot.lane.b32.xlu1 %v70_v4, %s86_s26 }
   0xd   :  { %44 = vrot.lane.b32.xlu2 %v72_v5, %s87_s3 }
  0x12   :  { %51 = vrot.lane.b32.xlu0 %v73_v6, %s88_s4 }
  0x5f   :  { %v38_v8 = vpop.permute.xlu2 %37  }
  0x67   :  { %v45_v9 = vpop.permute.xlu2 %44  }
  0x74   :  { %v10_v10 = vpop.permute.xlu0 %9   ;;  %v24_v11 = vpop.permute.xlu1 %23  }
  0x75   :  { %12 = vst.msk [vmem:[#allocation0] ss:$8 sm:$0x3] %vm11_vm1, %v10_v10  }
  0x7c   :  { %v17_v12 = vpop.permute.xlu0 %16   ;;  %v31_v13 = vpop.permute.xlu1 %30  }
  0x7d   :  { %19 = vst.msk [vmem:[#allocation0] ss:$8 sm:$0x3] %vm18_vm2, %v17_v12  }
  0x7e   :  { %26 = vst.msk [vmem:[#allocation0] ss:$8 sm:$0x3] %vm25_vm3, %v24_v11  }
  0x7f   :  { %33 = vst.msk [vmem:[#allocation0] ss:$8 sm:$0x3] %vm32_vm4, %v31_v13  }
  0x80   :  { %40 = vst.msk [vmem:[#allocation0] ss:$8 sm:$0x3] %vm39_vm5, %v38_v8  }
  0x81   :  { %47 = vst.msk [vmem:[#allocation0] ss:$8 sm:$0x3] %vm46_vm6, %v45_v9  }
  0x84   :  { %v52_v14 = vpop.permute.xlu0 %51  }
  0x85   :  { %54 = vst.msk [vmem:[#allocation0] ss:$8 sm:$0x3] %vm53_vm7, %v52_v14  }
  0x8c   :  { %v57_v15 = vld [vmem:[#allocation0] sm:$0x1]  ;;  %v62_v16 = vld [vmem:[#allocation0 + $0x8] sm:$0x1] }
  0x8d   :  { %60 = vst [vmem:[%s130_s1] sm:$0x1] %v57_v15 }
  0x8e   :  { %74 = vst [vmem:[%s130_s1 + $0x1] sm:$0x1] %v62_v16 }

// kernel: mobilenet_block.5
= control target key start
LH: loop header
LB: loop body
LE: loop exit
PB: predicated region body
PF: predicated region fallthrough
CT: control target
= control target key end

     0   :  { %s398_s3 = inlined_call_operand.vmem [shape: f32[128,256], index: 3, kind: input, shape index: {}]   ;;  %s399_s1 = inlined_call_operand.vmem [shape: f32[1,128], index: 1, kind: input, shape index: {}]   ;;  %s400_s2 = inlined_call_operand.vmem [shape: f32[1,128], index: 2, kind: input, shape index: {}]   ;;  %s401_s0 = inlined_call_operand.vmem [shape: f32[32,128], index: 0, kind: input, shape index: {}]   ;;  %s402_s4 = inlined_call_operand.vmem [shape: f32[1,256], index: 4, kind: input, shape index: {}]   ;;  %s403_s5 = inlined_call_operand.vmem [shape: f32[1,256], index: 5, kind: input, shape index: {}]   ;;  %s404_s6 = inlined_call_operand.vmem [shape: f32[32,256], index: 6, kind: output, shape index: {}]  }
   0x1   :  { %v77_v0 = vld [vmem:[%s398_s3 + $0xf0] sm:$0xff]  ;;  %v78_v1 = vld [vmem:[%s398_s3 + $0xf8] sm:$0xff]  ;;  %v75_v2 = vld [vmem:[%s398_s3 + $0xe0] sm:$0xff] }
   0x2   :  { %185 = vmatpush.msra.mxu2 %v77_v0  ;;  %201 = vmatpush.msra.mxu3 %v78_v1  ;;  %v76_v3 = vld [vmem:[%s398_s3 + $0xe8] sm:$0xff]  ;;  %v73_v4 = vld [vmem:[%s398_s3 + $0xd0] sm:$0xff]  ;;  %v74_v5 = vld [vmem:[%s398_s3 + $0xd8] sm:$0xff] }
   0x3   :  { %79 = vmatpush.msra.mxu0 %v77_v0  ;;  %108 = vmatpush.msra.mxu1 %v78_v1  ;;  %v71_v6 = vld [vmem:[%s398_s3 + $0xc0] sm:$0xff]  ;;  %v72_v7 = vld [vmem:[%s398_s3 + $0xc8] sm:$0xff]  ;;  %v69_v8 = vld [vmem:[%s398_s3 + $0xb0] sm:$0xff] }
   0x4   :  { %186 = vmatpush.msra.mxu2 %v75_v2  ;;  %202 = vmatpush.msra.mxu3 %v76_v3  ;;  %v70_v9 = vld [vmem:[%s398_s3 + $0xb8] sm:$0xff]  ;;  %v67_v10 = vld [vmem:[%s398_s3 + $0xa0] sm:$0xff]  ;;  %v68_v11 = vld [vmem:[%s398_s3 + $0xa8] sm:$0xff] }
   0x5   :  { %80 = vmatpush.msra.mxu0 %v75_v2  ;;  %109 = vmatpush.msra.mxu1 %v76_v3  ;;  %v65_v12 = vld [vmem:[%s398_s3 + $0x90] sm:$0xff]  ;;  %v66_v13 = vld [vmem:[%s398_s3 + $0x98] sm:$0xff]  ;;  %v63_v14 = vld [vmem:[%s398_s3 + $0x80] sm:$0xff] }
   0x6   :  { %187 = vmatpush.msra.mxu2 %v73_v4  ;;  %203 = vmatpush.msra.mxu3 %v74_v5  ;;  %v64_v15 = vld [vmem:[%s398_s3 + $0x88] sm:$0xff]  ;;  %v61_v16 = vld [vmem:[%s398_s3 + $0x70] sm:$0xff]  ;;  %v62_v17 = vld [vmem:[%s398_s3 + $0x78] sm:$0xff] }
   0x7   :  { %81 = vmatpush.msra.mxu0 %v73_v4  ;;  %110 = vmatpush.msra.mxu1 %v74_v5  ;;  %v59_v18 = vld [vmem:[%s398_s3 + $0x60] sm:$0xff]  ;;  %v60_v19 = vld [vmem:[%s398_s3 + $0x68] sm:$0xff]  ;;  %v25_v21 = vld [vmem:[%s401_s0 + $0x10] sm:$0xff] }
   0x8   :  { %188 = vmatpush.msra.mxu2 %v71_v6  ;;  %204 = vmatpush.msra.mxu3 %v72_v7  ;;  %v217_v20 = vld [vmem:[%s399_s1] ss:$0 sm:$0xff]  ;;  %v57_v22 = vld [vmem:[%s398_s3 + $0x50] sm:$0xff]  ;;  %v58_v23 = vld [vmem:[%s398_s3 + $0x58] sm:$0xff] }
   0x9   :  { %82 = vmatpush.msra.mxu0 %v71_v6  ;;  %111 = vmatpush.msra.mxu1 %v72_v7  ;;  %v23_v24 = vld [vmem:[%s401_s0] sm:$0xff]  ;;  %v56_v26 = vld [vmem:[%s398_s3 + $0x48] sm:$0xff]  ;;  %v33_v27 = vmul.f32 %v217_v20, %v25_v21  ;;  %v53_v29 = vld [vmem:[%s398_s3 + $0x30] sm:$0xff] }
   0xa   :  { %189 = vmatpush.msra.mxu2 %v69_v8  ;;  %205 = vmatpush.msra.mxu3 %v70_v9  ;;  %v55_v25 = vld [vmem:[%s398_s3 + $0x40] sm:$0xff]  ;;  %v54_v30 = vld [vmem:[%s398_s3 + $0x38] sm:$0xff]  ;;  %v31_v31 = vmul.f32 %v217_v20, %v23_v24  ;;  %v52_v33 = vld [vmem:[%s398_s3 + $0x28] sm:$0xff] }
   0xb   :  { %83 = vmatpush.msra.mxu0 %v69_v8  ;;  %112 = vmatpush.msra.mxu1 %v70_v9  ;;  %v218_v28 = vld [vmem:[%s400_s2] ss:$0 sm:$0xff]  ;;  %v26_v35 = vld [vmem:[%s401_s0 + $0x18] sm:$0xff]  ;;  %v49_v36 = vld [vmem:[%s398_s3 + $0x10] sm:$0xff] }
   0xc   :  { %190 = vmatpush.msra.mxu2 %v67_v10  ;;  %206 = vmatpush.msra.mxu3 %v68_v11  ;;  %v51_v32 = vld [vmem:[%s398_s3 + $0x20] sm:$0xff]  ;;  %v41_v34 = vadd.f32 %v218_v28, %v33_v27  ;;  %v50_v37 = vld [vmem:[%s398_s3 + $0x18] sm:$0xff]  ;;  %v39_v38 = vadd.f32 %v218_v28, %v31_v31  ;;  %v24_v39 = vld [vmem:[%s401_s0 + $0x8] sm:$0xff]  ;;  %v34_v43 = vmul.f32 %v217_v20, %v26_v35 }
   0xd   :  { %84 = vmatpush.msra.mxu0 %v67_v10  ;;  %113 = vmatpush.msra.mxu1 %v68_v11  ;;  %v47_v40 = vld [vmem:[%s398_s3] sm:$0xff]  ;;  %v48_v41 = vld [vmem:[%s398_s3 + $0x8] sm:$0xff]  ;;  %v32_v45 = vmul.f32 %v217_v20, %v24_v39 }
   0xe   :  { %191 = vmatpush.msra.mxu2 %v65_v12  ;;  %207 = vmatpush.msra.mxu3 %v66_v13  ;;  %v45_v42 = vmax.f32 %v41_v34, 0.0  ;;  %v43_v44 = vmax.f32 %v39_v38, 0.0  ;;  %v42_v46 = vadd.f32 %v218_v28, %v34_v43  ;;  %v137_v50 = vld [vmem:[%s402_s4] sm:$0x3] }
   0xf   :  { %85 = vmatpush.msra.mxu0 %v65_v12  ;;  %114 = vmatpush.msra.mxu1 %v66_v13  ;;  %v40_v47 = vadd.f32 %v218_v28, %v32_v45  ;;  %v151_v51 = vld [vmem:[%s403_s5] sm:$0x3]  ;;  %v139_v52 = vperm.slane %v137_v50, 0  ;;  %v140_v53 = vperm.slane %v137_v50, 1 }
  0x10   :  { %192 = vmatpush.msra.mxu2 %v63_v14  ;;  %208 = vmatpush.msra.mxu3 %v64_v15  ;;  %v46_v48 = vmax.f32 %v42_v46, 0.0  ;;  %v153_v54 = vperm.slane %v151_v51, 0  ;;  %v154_v55 = vperm.slane %v151_v51, 1 }
  0x11   :  { %86 = vmatpush.msra.mxu0 %v63_v14  ;;  %115 = vmatpush.msra.mxu1 %v64_v15  ;;  %v44_v49 = vmax.f32 %v40_v47, 0.0 }
  0x12   :  { %193 = vmatpush.msra.mxu2 %v61_v16  ;;  %209 = vmatpush.msra.mxu3 %v62_v17 }
  0x13   :  { %87 = vmatpush.msra.mxu0 %v61_v16  ;;  %116 = vmatpush.msra.mxu1 %v62_v17 }
  0x14   :  { %194 = vmatpush.msra.mxu2 %v59_v18  ;;  %210 = vmatpush.msra.mxu3 %v60_v19 }
  0x15   :  { %88 = vmatpush.msra.mxu0 %v59_v18  ;;  %117 = vmatpush.msra.mxu1 %v60_v19 }
  0x16   :  { %195 = vmatpush.msra.mxu2 %v57_v22  ;;  %211 = vmatpush.msra.mxu3 %v58_v23 }
  0x17   :  { %89 = vmatpush.msra.mxu0 %v57_v22  ;;  %118 = vmatpush.msra.mxu1 %v58_v23 }
  0x18   :  { %196 = vmatpush.msra.mxu2 %v55_v25  ;;  %212 = vmatpush.msra.mxu3 %v56_v26 }
  0x19   :  { %90 = vmatpush.msra.mxu0 %v55_v25  ;;  %119 = vmatpush.msra.mxu1 %v56_v26 }
  0x1a   :  { %197 = vmatpush.msra.mxu2 %v53_v29  ;;  %213 = vmatpush.msra.mxu3 %v54_v30 }
  0x1b   :  { %91 = vmatpush.msra.mxu0 %v53_v29  ;;  %120 = vmatpush.msra.mxu1 %v54_v30 }
  0x1c   :  { %198 = vmatpush.msra.mxu2 %v51_v32  ;;  %214 = vmatpush.msra.mxu3 %v52_v33 }
  0x1d   :  { %92 = vmatpush.msra.mxu0 %v51_v32  ;;  %121 = vmatpush.msra.mxu1 %v52_v33 }
  0x1e   :  { %199 = vmatpush.msra.mxu2 %v49_v36  ;;  %215 = vmatpush.msra.mxu3 %v50_v37 }
  0x1f   :  { %93 = vmatpush.msra.mxu0 %v49_v36  ;;  %122 = vmatpush.msra.mxu1 %v50_v37 }
  0x20   :  { %200 = vmatpush.msra.mxu2 %v47_v40  ;;  %216 = vmatpush.msra.mxu3 %v48_v41 }
  0x21   :  { %101 = vmatmul.f32.vlgmr.msra.gmra.mxu2 %v45_v42  ;;  %130 = vmatmul.f32.vlgmr.msra.gmra.mxu3 %v45_v42 }
  0x22   :  { %94 = vmatpush.msra.mxu0 %v47_v40  ;;  %123 = vmatpush.msra.mxu1 %v48_v41 }
  0x23   :  { %95 = vmatmul.f32.vlgmr.msra.gmra.mxu0 %v43_v44  ;;  %124 = vmatmul.f32.vlgmr.msra.gmra.mxu1 %v43_v44 }
  0x29   :  { %104 = vmatmul.f32.gmra.mxu2 %v46_v48  ;;  %133 = vmatmul.f32.gmra.mxu3 %v46_v48 }
  0x2b   :  { %98 = vmatmul.f32.gmra.mxu0 %v44_v49  ;;  %127 = vmatmul.f32.gmra.mxu1 %v44_v49 }
  0xa0   :  { %v96_v56 = vpop.f32.mrf.mxu0  ;;  %v125_v57 = vpop.f32.mrf.mxu1 }
  0xa1   :  { %v143_v58 = vmul.f32 %v139_v52, %v96_v56  ;;  %v144_v59 = vmul.f32 %v140_v53, %v125_v57 }
  0xa3   :  { %v157_v60 = vadd.f32 %v153_v54, %v143_v58  ;;  %v158_v61 = vadd.f32 %v154_v55, %v144_v59 }
  0xa4   :  { %v102_v62 = vpop.f32.mrf.mxu2  ;;  %v131_v63 = vpop.f32.mrf.mxu3 }
  0xa5   :  { %v165_v0 = vmax.f32 %v157_v60, 0.0  ;;  %v147_v1 = vmul.f32 %v139_v52, %v102_v62  ;;  %v166_v2 = vmax.f32 %v158_v61, 0.0  ;;  %v148_v3 = vmul.f32 %v140_v53, %v131_v63 }
  0xa7   :  { %173 = vst [vmem:[%s404_s6] sm:$0xff] %v165_v0  ;;  %v161_v4 = vadd.f32 %v153_v54, %v147_v1  ;;  %v162_v5 = vadd.f32 %v154_v55, %v148_v3 }
  0xa8   :  { %174 = vst [vmem:[%s404_s6 + $0x8] sm:$0xff] %v166_v2  ;;  %v99_v6 = vpop.f32.mrf.mxu0  ;;  %v128_v7 = vpop.f32.mrf.mxu1 }
  0xa9   :  { %v169_v8 = vmax.f32 %v161_v4, 0.0  ;;  %v170_v9 = vmax.f32 %v162_v5, 0.0  ;;  %v145_v10 = vmul.f32 %v139_v52, %v99_v6  ;;  %v146_v11 = vmul.f32 %v140_v53, %v128_v7 }
  0xab   :  { %177 = vst [vmem:[%s404_s6 + $0x20] sm:$0xff] %v169_v8  ;;  %v159_v12 = vadd.f32 %v153_v54, %v145_v10  ;;  %v160_v13 = vadd.f32 %v154_v55, %v146_v11 }
  0xac   :  { %178 = vst [vmem:[%s404_s6 + $0x28] sm:$0xff] %v170_v9  ;;  %v105_v14 = vpop.f32.mrf.mxu2  ;;  %v134_v15 = vpop.f32.mrf.mxu3 }
  0xad   :  { %v167_v16 = vmax.f32 %v159_v12, 0.0  ;;  %v149_v17 = vmul.f32 %v139_v52, %v105_v14  ;;  %v168_v18 = vmax.f32 %v160_v13, 0.0  ;;  %v150_v19 = vmul.f32 %v140_v53, %v134_v15 }
  0xaf   :  { %175 = vst [vmem:[%s404_s6 + $0x10] sm:$0xff] %v167_v16  ;;  %v163_v20 = vadd.f32 %v153_v54, %v149_v17  ;;  %v164_v21 = vadd.f32 %v154_v55, %v150_v19 }
  0xb0   :  { %176 = vst [vmem:[%s404_s6 + $0x18] sm:$0xff] %v168_v18 }
  0xb1   :  { %v171_v22 = vmax.f32 %v163_v20, 0.0  ;;  %v172_v23 = vmax.f32 %v164_v21, 0.0 }
  0xb3   :  { %179 = vst [vmem:[%s404_s6 + $0x30] sm:$0xff] %v171_v22 }
  0xb4   :  { %180 = vst [vmem:[%s404_s6 + $0x38] sm:$0xff] %v172_v23 }

</bundles_post_ra>
